<compile_context>
chip_gen: v5e
topology: v5e:2x2
jax: 0.10.0
libtpu: 0.0.40
codegen_flags: <defaults>
</compile_context>

<pallas_src>
import functools

import jax
import jax.numpy as jnp
import numpy as np
from jax.experimental import pallas as pl
from jax.experimental.pallas import tpu as pltpu

# ------------------------- problem sizes (small) -------------------------
NUM_LAYERS = 2          # self.num_layers (exercise the layer loop)
BATCH = 2
SEQ = 8
TCH_DIM = 512           # self.tch_embedding_size (CLIP)
STU_DIM = 768           # student_config.hidden_size (mBERT)
NUM_TOKEN = 8           # len(src_idx) == len(tgt_idx)
NUM_HIDDEN_STATES = 3   # how many hidden-state layers the fake encoders emit


# ------------------------------ wrapper + kernel ---------------------------
def token_alignment_forward(src_hidden_states, tgt_hidden_states,
                            src_idx, tgt_idx, ae_w_bf16, ae_b,
                            num_layers=NUM_LAYERS):
    """src_hidden_states: [H, B, S, TCH_DIM] f32, tgt_hidden_states: [H, B, S, STU_DIM] f32,
    src_idx/tgt_idx: [num_token] int32 indices into the flattened (B*S) rows.
    ae_w_bf16 should be pre-cast to bf16 once and reused across calls."""
    H, B, S, _ = src_hidden_states.shape
    L = num_layers
    n_rows = B * S
    num_token = src_idx.shape[0]
    tok_pad = ((num_token + 7) // 8) * 8     # sublane-pad the matmul M dim

    # Metadata-only reshapes: no per-call stack / layer-select materialization.
    src_r = src_hidden_states.reshape(H, n_rows, TCH_DIM)
    tgt_r = tgt_hidden_states.reshape(H, n_rows, STU_DIM)
    # No-op when already bf16 (pre-cast persistently by the caller).
    w_bf16 = ae_w_bf16.astype(jnp.bfloat16)
    b2d = ae_b.reshape(1, TCH_DIM).astype(jnp.float32)

    def kernel(src_idx_ref, tgt_idx_ref,           # scalar prefetch (SMEM)
               src_ref, tgt_ref, w_ref, b_ref,     # VMEM inputs
               src_out_ref, tgt_out_ref,           # VMEM outputs
               tgt_buf):                           # VMEM scratch
        # Zero the padded rows (only when num_token % 8 != 0; static if).
        if tok_pad > num_token:
            pad = tok_pad - num_token
            tgt_buf[pl.ds(num_token, pad), :] = jnp.zeros((pad, STU_DIM),
                                                          jnp.float32)
            src_out_ref[pl.ds(num_token, pad), :] = jnp.zeros((pad, TCH_DIM),
                                                              jnp.float32)

        # In-VMEM row gather with dynamic sublane slices.  No DMA descriptors,
        # no semaphore waits: the layer slabs were brought in by BlockSpec.
        for t in range(num_token):                 # static unroll (tiny)
            src_out_ref[pl.ds(t, 1), :] = src_ref[pl.ds(src_idx_ref[t], 1), :]
            tgt_buf[pl.ds(t, 1), :] = tgt_ref[pl.ds(tgt_idx_ref[t], 1), :]

        # AE encoder: ONE (tok_pad, 768) x (768, 512) MXU matmul,
        # bf16 x bf16 operands, f32 accumulation; f32 bias + ReLU epilogue.
        h = jnp.dot(tgt_buf[...].astype(jnp.bfloat16), w_ref[...],
                    preferred_element_type=jnp.float32)
        tgt_out_ref[...] = jnp.maximum(h + b_ref[...], 0.0)

    grid_spec = pltpu.PrefetchScalarGridSpec(
        num_scalar_prefetch=2,
        grid=(L,),
        in_specs=[
            # layer i of the forward loop is hidden_states[-1 - i] == index H-1-l
            pl.BlockSpec((None, n_rows, TCH_DIM),
                         lambda l, sidx, tidx: (H - 1 - l, 0, 0)),
            pl.BlockSpec((None, n_rows, STU_DIM),
                         lambda l, sidx, tidx: (H - 1 - l, 0, 0)),
            pl.BlockSpec((STU_DIM, TCH_DIM),                   # AE weight (bf16)
                         lambda l, sidx, tidx: (0, 0)),
            pl.BlockSpec((1, TCH_DIM),                         # AE bias (f32)
                         lambda l, sidx, tidx: (0, 0)),
        ],
        out_specs=[
            pl.BlockSpec((tok_pad, TCH_DIM),                   # teacher gather
                         lambda l, sidx, tidx: (l, 0)),
            pl.BlockSpec((tok_pad, TCH_DIM),                   # AE(student gather)
                         lambda l, sidx, tidx: (l, 0)),
        ],
        scratch_shapes=[
            pltpu.VMEM((tok_pad, STU_DIM), jnp.float32),       # gathered rows
        ],
    )

    bytes_accessed = (
        STU_DIM * TCH_DIM * 2 + TCH_DIM * 4                    # weight + bias
        + L * n_rows * (TCH_DIM + STU_DIM) * 4                 # layer slabs read
        + 2 * L * tok_pad * TCH_DIM * 4)                       # both outputs

    src_out_flat, tgt_out_flat = pl.pallas_call(
        kernel,
        grid_spec=grid_spec,
        out_shape=(
            jax.ShapeDtypeStruct((L * tok_pad, TCH_DIM), jnp.float32),
            jax.ShapeDtypeStruct((L * tok_pad, TCH_DIM), jnp.float32),
        ),
        compiler_params=pltpu.CompilerParams(
            dimension_semantics=("parallel",)),                # layers disjoint
        cost_estimate=pl.CostEstimate(
            flops=2 * L * tok_pad * STU_DIM * TCH_DIM,
            transcendentals=0,
            bytes_accessed=bytes_accessed),
    )(src_idx, tgt_idx, src_r, tgt_r, w_bf16, b2d)

    src_out = src_out_flat.reshape(L, tok_pad, TCH_DIM)[:, :num_token, :]
    tgt_out = tgt_out_flat.reshape(L, tok_pad, TCH_DIM)[:, :num_token, :]
    return src_out, tgt_out


# ----------------------------- reference ----------------------------------
def reference_forward(src_hidden_states, tgt_hidden_states,
                      src_idx, tgt_idx, ae_w_bf16, ae_b,
                      num_layers=NUM_LAYERS):
    L = num_layers
    src_out = jnp.stack([
        src_hidden_states[-1 - i].reshape(-1, TCH_DIM)[src_idx]
        for i in range(L)])
    tgt_gath = jnp.stack([
        tgt_hidden_states[-1 - i].reshape(-1, STU_DIM)[tgt_idx]
        for i in range(L)])
    # Match the kernel's bf16 quantization (f32 accumulation on the MXU).
    h = jnp.dot(tgt_gath.astype(jnp.bfloat16),
                ae_w_bf16.astype(jnp.bfloat16),
                preferred_element_type=jnp.float32)
    tgt_out = jnp.maximum(h + ae_b, 0.0)
    return src_out, tgt_out


# ------------------------------- main --------------------------------------
if __name__ == "__main__":
    key = jax.random.PRNGKey(0)
    k1, k2, k3, k4, k5 = jax.random.split(key, 5)

    # Precomputed hidden states standing in for the teacher / student encoders.
    src_hidden_states = jax.random.normal(
        k1, (NUM_HIDDEN_STATES, BATCH, SEQ, TCH_DIM), dtype=jnp.float32)
    tgt_hidden_states = jax.random.normal(
        k2, (NUM_HIDDEN_STATES, BATCH, SEQ, STU_DIM), dtype=jnp.float32)

    # Token alignment indices into the flattened (batch*seq) rows.
    src_idx = jax.random.randint(k3, (NUM_TOKEN,), 0, BATCH * SEQ, dtype=jnp.int32)
    tgt_idx = jax.random.randint(k4, (NUM_TOKEN,), 0, BATCH * SEQ, dtype=jnp.int32)

    # Deterministic AE encoder parameters (Linear STU_DIM -> TCH_DIM).
    ae_w = (jax.random.normal(k5, (STU_DIM, TCH_DIM), dtype=jnp.float32)
            * (1.0 / np.sqrt(STU_DIM)))
    ae_b = jnp.zeros((TCH_DIM,), dtype=jnp.float32)
    # Cast once and carry persistently (not per forward call).
    ae_w_bf16 = ae_w.astype(jnp.bfloat16)

    fwd = jax.jit(functools.partial(token_alignment_forward,
                                    num_layers=NUM_LAYERS))
    src_out, tgt_out = fwd(src_hidden_states, tgt_hidden_states,
                           src_idx, tgt_idx, ae_w_bf16, ae_b)
    jax.block_until_ready((src_out, tgt_out))

    ref_src, ref_tgt = reference_forward(
        src_hidden_states, tgt_hidden_states, src_idx, tgt_idx, ae_w_bf16, ae_b)

    # Teacher path is a pure gather -> (near-)exact.
    np.testing.assert_allclose(np.asarray(src_out), np.asarray(ref_src),
                               rtol=1e-6, atol=1e-6)
    # Student path: bf16 x bf16 MXU matmul with f32 accumulation.
    np.testing.assert_allclose(np.asarray(tgt_out), np.asarray(ref_tgt),
                               rtol=2e-3, atol=2e-3)

    print("KERNEL_OK")
</pallas_src>

<mosaic_0001>
module attributes {stable_mosaic.version = 11 : i64} {
  func.func @kernel(%arg0: i32, %arg1: memref<8xi32, #tpu.memory_space<smem>>, %arg2: memref<8xi32, #tpu.memory_space<smem>>, %arg3: memref<1x16x512xf32, #tpu.memory_space<vmem>>, %arg4: memref<1x16x768xf32, #tpu.memory_space<vmem>>, %arg5: memref<768x512xbf16, #tpu.memory_space<vmem>>, %arg6: memref<1x512xf32, #tpu.memory_space<vmem>>, %arg7: memref<8x512xf32, #tpu.memory_space<vmem>>, %arg8: memref<8x512xf32, #tpu.memory_space<vmem>>, %arg9: memref<8x768xf32, #tpu.memory_space<vmem>>) attributes {dimension_semantics = [#tpu.dimension_semantics<parallel>], iteration_bounds = array<i64: 2>, scalar_prefetch = 2 : i64, scratch_operands = 1 : i64, tpu.core_type = #tpu.core_type<tc>, window_params = [{transform_indices = @transform_0, window_bounds = array<i64: 1, 16, 512>}, {transform_indices = @transform_1, window_bounds = array<i64: 1, 16, 768>}, {pipeline_mode = #tpu.pipeline_mode<synchronous>, transform_indices = @transform_2, window_bounds = array<i64: 768, 512>}, {pipeline_mode = #tpu.pipeline_mode<synchronous>, transform_indices = @transform_3, window_bounds = array<i64: 1, 512>}, {transform_indices = @transform_4, window_bounds = array<i64: 8, 512>}, {transform_indices = @transform_5, window_bounds = array<i64: 8, 512>}]} {
    %c0 = arith.constant 0 : index
    %0 = memref.load %arg1[%c0] : memref<8xi32, #tpu.memory_space<smem>>
    %c0_0 = arith.constant 0 : index
    %1 = arith.index_cast %0 : i32 to index
    %c0_1 = arith.constant 0 : index
    %2 = vector.load %arg3[%c0_0, %1, %c0_1] : memref<1x16x512xf32, #tpu.memory_space<vmem>>, vector<1x1x512xf32>
    %3 = vector.shape_cast %2 : vector<1x1x512xf32> to vector<1x512xf32>
    %c0_2 = arith.constant 0 : index
    %c0_3 = arith.constant 0 : index
    %4 = vector.load %arg7[%c0_2, %c0_3] : memref<8x512xf32, #tpu.memory_space<vmem>>, vector<1x512xf32>
    tpu.vector_store %arg7[%c0_2, %c0_3], %3 {strides = array<i32>} : memref<8x512xf32, #tpu.memory_space<vmem>>, vector<1x512xf32>,
    %c0_4 = arith.constant 0 : index
    %5 = memref.load %arg2[%c0_4] : memref<8xi32, #tpu.memory_space<smem>>
    %c0_5 = arith.constant 0 : index
    %6 = arith.index_cast %5 : i32 to index
    %c0_6 = arith.constant 0 : index
    %7 = vector.load %arg4[%c0_5, %6, %c0_6] : memref<1x16x768xf32, #tpu.memory_space<vmem>>, vector<1x1x768xf32>
    %8 = vector.shape_cast %7 : vector<1x1x768xf32> to vector<1x768xf32>
    %c0_7 = arith.constant 0 : index
    %c0_8 = arith.constant 0 : index
    %9 = vector.load %arg9[%c0_7, %c0_8] : memref<8x768xf32, #tpu.memory_space<vmem>>, vector<1x768xf32>
    tpu.vector_store %arg9[%c0_7, %c0_8], %8 {strides = array<i32>} : memref<8x768xf32, #tpu.memory_space<vmem>>, vector<1x768xf32>,
    %c1 = arith.constant 1 : index
    %10 = memref.load %arg1[%c1] : memref<8xi32, #tpu.memory_space<smem>>
    %c0_9 = arith.constant 0 : index
    %11 = arith.index_cast %10 : i32 to index
    %c0_10 = arith.constant 0 : index
    %12 = vector.load %arg3[%c0_9, %11, %c0_10] : memref<1x16x512xf32, #tpu.memory_space<vmem>>, vector<1x1x512xf32>
    %13 = vector.shape_cast %12 : vector<1x1x512xf32> to vector<1x512xf32>
    %c1_11 = arith.constant 1 : index
    %c0_12 = arith.constant 0 : index
    %14 = vector.load %arg7[%c1_11, %c0_12] : memref<8x512xf32, #tpu.memory_space<vmem>>, vector<1x512xf32>
    tpu.vector_store %arg7[%c1_11, %c0_12], %13 {strides = array<i32>} : memref<8x512xf32, #tpu.memory_space<vmem>>, vector<1x512xf32>,
    %c1_13 = arith.constant 1 : index
    %15 = memref.load %arg2[%c1_13] : memref<8xi32, #tpu.memory_space<smem>>
    %c0_14 = arith.constant 0 : index
    %16 = arith.index_cast %15 : i32 to index
    %c0_15 = arith.constant 0 : index
    %17 = vector.load %arg4[%c0_14, %16, %c0_15] : memref<1x16x768xf32, #tpu.memory_space<vmem>>, vector<1x1x768xf32>
    %18 = vector.shape_cast %17 : vector<1x1x768xf32> to vector<1x768xf32>
    %c1_16 = arith.constant 1 : index
    %c0_17 = arith.constant 0 : index
    %19 = vector.load %arg9[%c1_16, %c0_17] : memref<8x768xf32, #tpu.memory_space<vmem>>, vector<1x768xf32>
    tpu.vector_store %arg9[%c1_16, %c0_17], %18 {strides = array<i32>} : memref<8x768xf32, #tpu.memory_space<vmem>>, vector<1x768xf32>,
    %c2 = arith.constant 2 : index
    %20 = memref.load %arg1[%c2] : memref<8xi32, #tpu.memory_space<smem>>
    %c0_18 = arith.constant 0 : index
    %21 = arith.index_cast %20 : i32 to index
    %c0_19 = arith.constant 0 : index
    %22 = vector.load %arg3[%c0_18, %21, %c0_19] : memref<1x16x512xf32, #tpu.memory_space<vmem>>, vector<1x1x512xf32>
    %23 = vector.shape_cast %22 : vector<1x1x512xf32> to vector<1x512xf32>
    %c2_20 = arith.constant 2 : index
    %c0_21 = arith.constant 0 : index
    %24 = vector.load %arg7[%c2_20, %c0_21] : memref<8x512xf32, #tpu.memory_space<vmem>>, vector<1x512xf32>
    tpu.vector_store %arg7[%c2_20, %c0_21], %23 {strides = array<i32>} : memref<8x512xf32, #tpu.memory_space<vmem>>, vector<1x512xf32>,
    %c2_22 = arith.constant 2 : index
    %25 = memref.load %arg2[%c2_22] : memref<8xi32, #tpu.memory_space<smem>>
    %c0_23 = arith.constant 0 : index
    %26 = arith.index_cast %25 : i32 to index
    %c0_24 = arith.constant 0 : index
    %27 = vector.load %arg4[%c0_23, %26, %c0_24] : memref<1x16x768xf32, #tpu.memory_space<vmem>>, vector<1x1x768xf32>
    %28 = vector.shape_cast %27 : vector<1x1x768xf32> to vector<1x768xf32>
    %c2_25 = arith.constant 2 : index
    %c0_26 = arith.constant 0 : index
    %29 = vector.load %arg9[%c2_25, %c0_26] : memref<8x768xf32, #tpu.memory_space<vmem>>, vector<1x768xf32>
    tpu.vector_store %arg9[%c2_25, %c0_26], %28 {strides = array<i32>} : memref<8x768xf32, #tpu.memory_space<vmem>>, vector<1x768xf32>,
    %c3 = arith.constant 3 : index
    %30 = memref.load %arg1[%c3] : memref<8xi32, #tpu.memory_space<smem>>
    %c0_27 = arith.constant 0 : index
    %31 = arith.index_cast %30 : i32 to index
    %c0_28 = arith.constant 0 : index
    %32 = vector.load %arg3[%c0_27, %31, %c0_28] : memref<1x16x512xf32, #tpu.memory_space<vmem>>, vector<1x1x512xf32>
    %33 = vector.shape_cast %32 : vector<1x1x512xf32> to vector<1x512xf32>
    %c3_29 = arith.constant 3 : index
    %c0_30 = arith.constant 0 : index
    %34 = vector.load %arg7[%c3_29, %c0_30] : memref<8x512xf32, #tpu.memory_space<vmem>>, vector<1x512xf32>
    tpu.vector_store %arg7[%c3_29, %c0_30], %33 {strides = array<i32>} : memref<8x512xf32, #tpu.memory_space<vmem>>, vector<1x512xf32>,
    %c3_31 = arith.constant 3 : index
    %35 = memref.load %arg2[%c3_31] : memref<8xi32, #tpu.memory_space<smem>>
    %c0_32 = arith.constant 0 : index
    %36 = arith.index_cast %35 : i32 to index
    %c0_33 = arith.constant 0 : index
    %37 = vector.load %arg4[%c0_32, %36, %c0_33] : memref<1x16x768xf32, #tpu.memory_space<vmem>>, vector<1x1x768xf32>
    %38 = vector.shape_cast %37 : vector<1x1x768xf32> to vector<1x768xf32>
    %c3_34 = arith.constant 3 : index
    %c0_35 = arith.constant 0 : index
    %39 = vector.load %arg9[%c3_34, %c0_35] : memref<8x768xf32, #tpu.memory_space<vmem>>, vector<1x768xf32>
    tpu.vector_store %arg9[%c3_34, %c0_35], %38 {strides = array<i32>} : memref<8x768xf32, #tpu.memory_space<vmem>>, vector<1x768xf32>,
    %c4 = arith.constant 4 : index
    %40 = memref.load %arg1[%c4] : memref<8xi32, #tpu.memory_space<smem>>
    %c0_36 = arith.constant 0 : index
    %41 = arith.index_cast %40 : i32 to index
    %c0_37 = arith.constant 0 : index
    %42 = vector.load %arg3[%c0_36, %41, %c0_37] : memref<1x16x512xf32, #tpu.memory_space<vmem>>, vector<1x1x512xf32>
    %43 = vector.shape_cast %42 : vector<1x1x512xf32> to vector<1x512xf32>
    %c4_38 = arith.constant 4 : index
    %c0_39 = arith.constant 0 : index
    %44 = vector.load %arg7[%c4_38, %c0_39] : memref<8x512xf32, #tpu.memory_space<vmem>>, vector<1x512xf32>
    tpu.vector_store %arg7[%c4_38, %c0_39], %43 {strides = array<i32>} : memref<8x512xf32, #tpu.memory_space<vmem>>, vector<1x512xf32>,
    %c4_40 = arith.constant 4 : index
    %45 = memref.load %arg2[%c4_40] : memref<8xi32, #tpu.memory_space<smem>>
    %c0_41 = arith.constant 0 : index
    %46 = arith.index_cast %45 : i32 to index
    %c0_42 = arith.constant 0 : index
    %47 = vector.load %arg4[%c0_41, %46, %c0_42] : memref<1x16x768xf32, #tpu.memory_space<vmem>>, vector<1x1x768xf32>
    %48 = vector.shape_cast %47 : vector<1x1x768xf32> to vector<1x768xf32>
    %c4_43 = arith.constant 4 : index
    %c0_44 = arith.constant 0 : index
    %49 = vector.load %arg9[%c4_43, %c0_44] : memref<8x768xf32, #tpu.memory_space<vmem>>, vector<1x768xf32>
    tpu.vector_store %arg9[%c4_43, %c0_44], %48 {strides = array<i32>} : memref<8x768xf32, #tpu.memory_space<vmem>>, vector<1x768xf32>,
    %c5 = arith.constant 5 : index
    %50 = memref.load %arg1[%c5] : memref<8xi32, #tpu.memory_space<smem>>
    %c0_45 = arith.constant 0 : index
    %51 = arith.index_cast %50 : i32 to index
    %c0_46 = arith.constant 0 : index
    %52 = vector.load %arg3[%c0_45, %51, %c0_46] : memref<1x16x512xf32, #tpu.memory_space<vmem>>, vector<1x1x512xf32>
    %53 = vector.shape_cast %52 : vector<1x1x512xf32> to vector<1x512xf32>
    %c5_47 = arith.constant 5 : index
    %c0_48 = arith.constant 0 : index
    %54 = vector.load %arg7[%c5_47, %c0_48] : memref<8x512xf32, #tpu.memory_space<vmem>>, vector<1x512xf32>
    tpu.vector_store %arg7[%c5_47, %c0_48], %53 {strides = array<i32>} : memref<8x512xf32, #tpu.memory_space<vmem>>, vector<1x512xf32>,
    %c5_49 = arith.constant 5 : index
    %55 = memref.load %arg2[%c5_49] : memref<8xi32, #tpu.memory_space<smem>>
    %c0_50 = arith.constant 0 : index
    %56 = arith.index_cast %55 : i32 to index
    %c0_51 = arith.constant 0 : index
    %57 = vector.load %arg4[%c0_50, %56, %c0_51] : memref<1x16x768xf32, #tpu.memory_space<vmem>>, vector<1x1x768xf32>
    %58 = vector.shape_cast %57 : vector<1x1x768xf32> to vector<1x768xf32>
    %c5_52 = arith.constant 5 : index
    %c0_53 = arith.constant 0 : index
    %59 = vector.load %arg9[%c5_52, %c0_53] : memref<8x768xf32, #tpu.memory_space<vmem>>, vector<1x768xf32>
    tpu.vector_store %arg9[%c5_52, %c0_53], %58 {strides = array<i32>} : memref<8x768xf32, #tpu.memory_space<vmem>>, vector<1x768xf32>,
    %c6 = arith.constant 6 : index
    %60 = memref.load %arg1[%c6] : memref<8xi32, #tpu.memory_space<smem>>
    %c0_54 = arith.constant 0 : index
    %61 = arith.index_cast %60 : i32 to index
    %c0_55 = arith.constant 0 : index
    %62 = vector.load %arg3[%c0_54, %61, %c0_55] : memref<1x16x512xf32, #tpu.memory_space<vmem>>, vector<1x1x512xf32>
    %63 = vector.shape_cast %62 : vector<1x1x512xf32> to vector<1x512xf32>
    %c6_56 = arith.constant 6 : index
    %c0_57 = arith.constant 0 : index
    %64 = vector.load %arg7[%c6_56, %c0_57] : memref<8x512xf32, #tpu.memory_space<vmem>>, vector<1x512xf32>
    tpu.vector_store %arg7[%c6_56, %c0_57], %63 {strides = array<i32>} : memref<8x512xf32, #tpu.memory_space<vmem>>, vector<1x512xf32>,
    %c6_58 = arith.constant 6 : index
    %65 = memref.load %arg2[%c6_58] : memref<8xi32, #tpu.memory_space<smem>>
    %c0_59 = arith.constant 0 : index
    %66 = arith.index_cast %65 : i32 to index
    %c0_60 = arith.constant 0 : index
    %67 = vector.load %arg4[%c0_59, %66, %c0_60] : memref<1x16x768xf32, #tpu.memory_space<vmem>>, vector<1x1x768xf32>
    %68 = vector.shape_cast %67 : vector<1x1x768xf32> to vector<1x768xf32>
    %c6_61 = arith.constant 6 : index
    %c0_62 = arith.constant 0 : index
    %69 = vector.load %arg9[%c6_61, %c0_62] : memref<8x768xf32, #tpu.memory_space<vmem>>, vector<1x768xf32>
    tpu.vector_store %arg9[%c6_61, %c0_62], %68 {strides = array<i32>} : memref<8x768xf32, #tpu.memory_space<vmem>>, vector<1x768xf32>,
    %c7 = arith.constant 7 : index
    %70 = memref.load %arg1[%c7] : memref<8xi32, #tpu.memory_space<smem>>
    %c0_63 = arith.constant 0 : index
    %71 = arith.index_cast %70 : i32 to index
    %c0_64 = arith.constant 0 : index
    %72 = vector.load %arg3[%c0_63, %71, %c0_64] : memref<1x16x512xf32, #tpu.memory_space<vmem>>, vector<1x1x512xf32>
    %73 = vector.shape_cast %72 : vector<1x1x512xf32> to vector<1x512xf32>
    %c7_65 = arith.constant 7 : index
    %c0_66 = arith.constant 0 : index
    %74 = vector.load %arg7[%c7_65, %c0_66] : memref<8x512xf32, #tpu.memory_space<vmem>>, vector<1x512xf32>
    tpu.vector_store %arg7[%c7_65, %c0_66], %73 {strides = array<i32>} : memref<8x512xf32, #tpu.memory_space<vmem>>, vector<1x512xf32>,
    %c7_67 = arith.constant 7 : index
    %75 = memref.load %arg2[%c7_67] : memref<8xi32, #tpu.memory_space<smem>>
    %c0_68 = arith.constant 0 : index
    %76 = arith.index_cast %75 : i32 to index
    %c0_69 = arith.constant 0 : index
    %77 = vector.load %arg4[%c0_68, %76, %c0_69] : memref<1x16x768xf32, #tpu.memory_space<vmem>>, vector<1x1x768xf32>
    %78 = vector.shape_cast %77 : vector<1x1x768xf32> to vector<1x768xf32>
    %c7_70 = arith.constant 7 : index
    %c0_71 = arith.constant 0 : index
    %79 = vector.load %arg9[%c7_70, %c0_71] : memref<8x768xf32, #tpu.memory_space<vmem>>, vector<1x768xf32>
    tpu.vector_store %arg9[%c7_70, %c0_71], %78 {strides = array<i32>} : memref<8x768xf32, #tpu.memory_space<vmem>>, vector<1x768xf32>,
    %c0_72 = arith.constant 0 : index
    %c0_73 = arith.constant 0 : index
    %80 = vector.load %arg9[%c0_72, %c0_73] : memref<8x768xf32, #tpu.memory_space<vmem>>, vector<8x768xf32>
    %81 = arith.truncf %80 : vector<8x768xf32> to vector<8x768xbf16>
    %c0_74 = arith.constant 0 : index
    %c0_75 = arith.constant 0 : index
    %82 = vector.load %arg5[%c0_74, %c0_75] : memref<768x512xbf16, #tpu.memory_space<vmem>>, vector<768x512xbf16>
    %cst = arith.constant dense<0.000000e+00> : vector<8x512xf32>
    %83 = tpu.matmul %81, %82, %cst {dimension_numbers = #tpu.dot_dimension_numbers<[1], [0], [0], [1], [0, 0, 1, 1], [], []>} : vector<8x768xbf16>, vector<768x512xbf16>, vector<8x512xf32> -> vector<8x512xf32>
    %c0_76 = arith.constant 0 : index
    %c0_77 = arith.constant 0 : index
    %84 = vector.load %arg6[%c0_76, %c0_77] : memref<1x512xf32, #tpu.memory_space<vmem>>, vector<1x512xf32>
    %85 = vector.broadcast %84 : vector<1x512xf32> to vector<8x512xf32>
    %86 = arith.addf %83, %85 : vector<8x512xf32>
    %cst_78 = arith.constant 0.000000e+00 : f32
    %87 = vector.broadcast %cst_78 : f32 to vector<8x512xf32>
    %88 = arith.maximumf %86, %87 : vector<8x512xf32>
    %c0_79 = arith.constant 0 : index
    %c0_80 = arith.constant 0 : index
    %89 = vector.load %arg8[%c0_79, %c0_80] : memref<8x512xf32, #tpu.memory_space<vmem>>, vector<8x512xf32>
    tpu.vector_store %arg8[%c0_79, %c0_80], %88 {strides = array<i32>} : memref<8x512xf32, #tpu.memory_space<vmem>>, vector<8x512xf32>,
    return
  }
  func.func @transform_0(%arg0: i32, %arg1: memref<8xi32, #tpu.memory_space<smem>>, %arg2: memref<8xi32, #tpu.memory_space<smem>>) -> (i32, i32, i32) {
    %c2_i32 = arith.constant 2 : i32
    %0 = arith.subi %c2_i32, %arg0 : i32
    %c0_i32 = arith.constant 0 : i32
    %c0_i32_0 = arith.constant 0 : i32
    %c0_i32_1 = arith.constant 0 : i32
    return %0, %c0_i32, %c0_i32_0 : i32, i32, i32
  }
  func.func @transform_1(%arg0: i32, %arg1: memref<8xi32, #tpu.memory_space<smem>>, %arg2: memref<8xi32, #tpu.memory_space<smem>>) -> (i32, i32, i32) {
    %c2_i32 = arith.constant 2 : i32
    %0 = arith.subi %c2_i32, %arg0 : i32
    %c0_i32 = arith.constant 0 : i32
    %c0_i32_0 = arith.constant 0 : i32
    %c0_i32_1 = arith.constant 0 : i32
    return %0, %c0_i32, %c0_i32_0 : i32, i32, i32
  }
  func.func @transform_2(%arg0: i32, %arg1: memref<8xi32, #tpu.memory_space<smem>>, %arg2: memref<8xi32, #tpu.memory_space<smem>>) -> (i32, i32) {
    %c0_i32 = arith.constant 0 : i32
    %c0_i32_0 = arith.constant 0 : i32
    %c0_i32_1 = arith.constant 0 : i32
    return %c0_i32, %c0_i32_0 : i32, i32
  }
  func.func @transform_3(%arg0: i32, %arg1: memref<8xi32, #tpu.memory_space<smem>>, %arg2: memref<8xi32, #tpu.memory_space<smem>>) -> (i32, i32) {
    %c0_i32 = arith.constant 0 : i32
    %c0_i32_0 = arith.constant 0 : i32
    %c0_i32_1 = arith.constant 0 : i32
    return %c0_i32, %c0_i32_0 : i32, i32
  }
  func.func @transform_4(%arg0: i32, %arg1: memref<8xi32, #tpu.memory_space<smem>>, %arg2: memref<8xi32, #tpu.memory_space<smem>>) -> (i32, i32) {
    %c0_i32 = arith.constant 0 : i32
    %c0_i32_0 = arith.constant 0 : i32
    return %arg0, %c0_i32 : i32, i32
  }
  func.func @transform_5(%arg0: i32, %arg1: memref<8xi32, #tpu.memory_space<smem>>, %arg2: memref<8xi32, #tpu.memory_space<smem>>) -> (i32, i32) {
    %c0_i32 = arith.constant 0 : i32
    %c0_i32_0 = arith.constant 0 : i32
    return %arg0, %c0_i32 : i32, i32
  }
}

</mosaic_0001>

<bundles_post_ra>
// kernel: token_alignment_forward.1
= control target key start
LH: loop header
LB: loop body
LE: loop exit
PB: predicated region body
PF: predicated region fallthrough
CT: control target
= control target key end

     0   :  { %s3666_s30 = smov [#allocation4]   ;;  %s3667_s8 = smov [#allocation5]   ;;  %s4209_s0 = inlined_call_operand.vmem [shape: s32[8], index: 0, kind: input, shape index: {}]   ;;  %s4210_s2 = inlined_call_operand.hbm [shape: f32[3,16,512], index: 2, kind: input, shape index: {}]   ;;  %s4211_s3 = inlined_call_operand.hbm [shape: f32[3,16,768], index: 3, kind: input, shape index: {}]   ;;  %s4212_s4 = inlined_call_operand.hbm [shape: bf16[768,512], index: 4, kind: input, shape index: {}]   ;;  %s4213_s5 = inlined_call_operand.vmem [shape: f32[1,512], index: 5, kind: input, shape index: {}]   ;;  %s4214_s6 = inlined_call_operand.hbm [shape: f32[16,512], index: 6, kind: output, shape index: {0}]   ;;  %s4215_s7 = inlined_call_operand.hbm [shape: f32[16,512], index: 7, kind: output, shape index: {1}]   ;;  %s4216_s1 = inlined_call_operand.vmem [shape: s32[8], index: 1, kind: input, shape index: {}]  }
   0x1   :  { %4223 = sst [smem:[#allocation28_spill]] %s4210_s2  ;;  %s14_s26 = sshll.u32 %s4209_s0, 4  ;;  %s15_s26 = int_to_ptr.vmem [resolvable:$true] %s14_s26 }
   0x2   :  { %4224 = sst [smem:[#allocation29_spill]] %s4212_s4  ;;  %s19_s29 = sshll.u32 %s4216_s1, 4  ;;  %s20_s29 = int_to_ptr.vmem [resolvable:$true] %s19_s29 }
   0x3   :  { %17 = dma.vmem_to_smem %s15_s26, 16, %s3666_s30, [#allocation3] }
   0x4   :  { %22 = dma.vmem_to_smem %s20_s29, 16, %s3667_s8, [#allocation3] }
   0x5   :  { %3616 = dma.done.wait [#allocation3], 32 }
   0x6   :  { %3617 = vsyncadd [#allocation3], 4294967264 }
   0x7   :  { %25 = sfence }
   0x8   :  { %26 = vsyncpa [#allocation7], 0 }
   0x9   :  { %28 = vsyncpa [#allocation7 + $0x1], 0 }
   0xa   :  { %29 = vsyncpa [#allocation10], 0 }
   0xb   :  { %31 = vsyncpa [#allocation10 + $0x1], 0 }
   0xc   :  { %32 = vsyncpa [#allocation8], 0 }
   0xd   :  { %34 = vsyncpa [#allocation8 + $0x1], 0 }
   0xe   :  { %35 = vsyncpa [#allocation14], 0 }
   0xf   :  { %37 = vsyncpa [#allocation14 + $0x1], 0  ;;  %s3721_s0 = smov 0   ;;  %s3723_s1 = smov 0  }
  0x10   :  { %s3725_s9 = smov 0   ;;  %s3727_s10 = smov 0  }
  0x11   :  { %s3729_s11 = smov 0   ;;  %s3731_s12 = smov 0  }
  0x12   :  { %s3733_s13 = smov 0  }
  0x13 LB: > { %4225 = sst [smem:[#allocation21_spill]] %s3648_s9  ;;  %s3755_s14 = sadd.s32 4294967295, %s3664_s13   ;;  %s3664_s13 = sphi %s3733_s13, %s4249_s13   ;;  %s3660_s12 = sphi %s3731_s12, %s4253_s12   ;;  %s3656_s11 = sphi %s3729_s11, %s4257_s11   ;;  %s3652_s10 = sphi %s3727_s10, %s4256_s10   ;;  %s3648_s9 = sphi %s3725_s9, %s4251_s9   ;;  %s3644_s1 = sphi %s3723_s1, %s4255_s1   ;;  %s3640_s0 = sphi %s3721_s0, %s4254_s0  }
  0x14   : > { %4226 = sst [smem:[#allocation22_spill]] %s3660_s12  ;;  %s2279_s15 = sadd.s32 4294967294, %s3664_s13  }
  0x15   : > { %4227 = sst [smem:[#allocation23_spill]] %s3664_s13  ;;  %p65_p0 = scmp.ne.s32.totalorder %s3656_s11, %s3652_s10 }
  0x16   : > { %p66_p1 = scmp.eq.s32.totalorder %s3755_s14, 0  ;;  %p158_p2 = scmp.ne.s32.totalorder %s3648_s9, %s3644_s1 }
  0x17   : > { %p159_p3 = scmp.eq.s32.totalorder %s3755_s14, 1  ;;  %p164_p5 = scmp.ne.s32.totalorder %s3644_s1, %s3640_s0 }
  0x18   : > { %p3765_p4 = por %p66_p1, %p65_p0  ;;  %p165_p7 = scmp.eq.s32.totalorder %s2279_s15, 1 }
  0x19   : > { %p3771_p6 = por %p159_p3, %p158_p2  ;;  %p2280_p8 = scmp.ge.s32.totalorder %s3664_s13, 1 }
  0x1a   : > { %p198_p9 = scmp.lt.s32.totalorder %s3664_s13, 3  ;;  %p3777_p10 = por %p165_p7, %p164_p5 }
  0x1b   : > { %s4233_s4 = sld [smem:[#allocation29_spill]]  ;;  %s3668_s23 = smov [#allocation11]  }
  0x1c   : > { %s4230_s18 = scalar_select %p3777_p10, 1, 0 }
  0x1d   : > { %p3781_p11 = pnand %p2280_p8, %p198_p9  ;;  %s211_s24 = sshll.u32 %s3668_s23, 4  ;;  %s212_s24 = int_to_ptr.vmem [resolvable:$true] %s211_s24 }
  0x1e   : > { %4231 = sst [smem:[#allocation24_spill]] %s4230_s18  ;;  %s3669_s25 = smov 256  }
  0x1f   : > { %p3331_p12 = pneg %p3781_p11  ;;  %s3670_s26 = smov 16  }
  0x20   : > { %s3794_s27 = sadd.s32 1, %s3664_s13   ;;  %s3797_s28 = ssub.s32 2, %s3664_s13 }
  0x21   : > { %s209_s22 = sshll.u32 %s4233_s4, 4  ;;  %p3332_p13 = pnand %p3331_p12, %p66_p1  ;;  %s210_s22 = int_to_ptr.hbm [resolvable:$true] %s209_s22 }
  0x22   : > { %4234 = sst [smem:[#allocation25_spill]] %s3794_s27  ;;  %s48_s29 = ssub.s32 2, %s3794_s27 }
  0x23   : > { %3334 = dma.hbm_to_vmem [thread:$0]  (!%p3332_p13), %s210_s22, 24576, %s212_s24, [#allocation10], %s3669_s25, %s3669_s25, %s3670_s26  }
  0x24   : > { %s52_s30 = sadd.s32 1, %s3660_s12  ;;  %s49_s8 = ssub.s32 %s3797_s28, %s48_s29 }
  0x25   : > { %p59_p2 = scmp.ne.s32.totalorder %s3660_s12, %s3656_s11  ;;  %p50_p3 = scmp.eq.s32.totalorder %s49_s8, 0 }
  0x26   : > { %p60_p5 = scmp.eq.s32.totalorder %s3664_s13, 0  ;;  %s145_s10 = ssub.s32 %s3664_s13, %s3794_s27 }
  0x27   : > { %s148_s15 = sadd.s32 1, %s3648_s9  ;;  %p146_p8 = scmp.eq.s32.totalorder %s145_s10, 0 }
  0x28   : > { %s3809_s20 = scalar_select %p50_p3, %s3660_s12, %s52_s30  }
  0x29   : > { %p3811_p7 = por %p60_p5, %p59_p2  ;;  %p3350_p9 = scmp.lt.s32.totalorder %s3664_s13, 2 }
  0x2a   : > { %4235 = sst [smem:[#allocation26_spill]] %s3809_s20  ;;  %s3817_s22 = sand.u32 1, %s3660_s12  }
  0x2b   : > { %s3820_s23 = scalar_select %p146_p8, %s3648_s9, %s148_s15  }
  0x2c   : > { %s2283_s24 = sshll.u32 %s3817_s22, 6  ;;  %s3113_s25 = sshll.u32 %s3797_s28, 6 }
  0x2d   : > { %4237 = sst [smem:[#allocation27_spill]] %s3820_s23  ;;  %s232_s8 = scalar_lea.vmem [#allocation6], %s2283_s24 }
  0x2e   : > { %s4238_s2 = sld [smem:[#allocation28_spill]]  ;;  %s241_s4 = sshll.u32 %s232_s8, 4  ;;  %s242_s4 = int_to_ptr.vmem [resolvable:$true] %s241_s4 }
  0x2f   : > { %p3829_p12 = pnand %p3350_p9, %p3811_p7  ;;  %s251_s15 = sand.u32 1, %s3664_s13  }
  0x30   : > { %s229_s12 = scalar_lea.sflag [#allocation7], %s3817_s22 }
  0x31   : > { %p3476_p2 = pneg %p3829_p12 }
  0x34   : > { %s238_s30 = scalar_lea.hbm %s4238_s2, %s3113_s25  ;;  %s3479_s25 = scalar_lea.hbm %s4238_s2, 192 }
  0x35   : > { %s239_s20 = sshll.u32 %s238_s30, 4  ;;  %s240_s20 = int_to_ptr.hbm [resolvable:$true] %s239_s20 }
  0x36   : > { %s3472_s23 = sshra.s32 %s240_s20, 4  ;;  %s3473_s23 = int_to_ptr.hbm [resolvable:$true] %s3472_s23 }
  0x37   : > { %s3474_s9 = scalar_lea.hbm %s3473_s23, 64  ;;  %p3480_p7 = scmp.lt.s32.totalorder %s3473_s23, %s4238_s2 }
  0x38   : > { %p3475_p13 = scmp.ne.s32.totalorder %s3473_s23, %s3474_s9  ;;  %p3481_p8 = scmp.lt.s32.totalorder %s3479_s25, %s3474_s9 }
  0x3a   : > { %p3477_p3 = pnand %p3476_p2, %p3475_p13  ;;  %p3482_p9 = por %p3481_p8, %p3480_p7 }
  0x3c   : > { %p3478_p5 = pneg %p3477_p3 }
  0x3e   : > { %p3483_p0 = pnand %p3482_p9, %p3478_p5 }
  0x40   : > { %3486 = shalt.err (!%p3483_p0)
}
  0x41   : > { %s3671_s30 = smov 512   ;;  %s3672_s8 = smov 32  }
  0x42   : > { %3338 = dma.hbm_to_vmem [thread:$0]  (!%p3829_p12), %s240_s20, 1024, %s242_s4, %s229_s12, %s3671_s30, %s3671_s30, %s3672_s8  }
  0x43   : > { %s3316_s27 = smul.u32 96, %s3817_s22  ;;  %s252_s25 = scalar_lea.sflag [#allocation10], %s251_s15 }
  0x44   : > { %s3317_s13 = smul.u32 96, %s3797_s28  ;;  %s3509_s28 = scalar_lea.hbm %s4211_s3, 288 }
  0x45   : > { %s255_s26 = scalar_lea.vmem [#allocation9], %s3316_s27 }
  0x46   : > { %s261_s18 = scalar_lea.hbm %s4211_s3, %s3317_s13  ;;  %s264_s23 = sshll.u32 %s255_s26, 4  ;;  %s265_s23 = int_to_ptr.vmem [resolvable:$true] %s264_s23 }
  0x47   : > { %s262_s9 = sshll.u32 %s261_s18, 4  ;;  %s263_s9 = int_to_ptr.hbm [resolvable:$true] %s262_s9 }
  0x48   : > { %s3502_s29 = sshra.s32 %s263_s9, 4  ;;  %s3503_s29 = int_to_ptr.hbm [resolvable:$true] %s3502_s29 }
  0x49   : > { %s3504_s2 = scalar_lea.hbm %s3503_s29, 96  ;;  %p3510_p5 = scmp.lt.s32.totalorder %s3503_s29, %s4211_s3 }
  0x4a   : > { %p3505_p0 = scmp.ne.s32.totalorder %s3503_s29, %s3504_s2  ;;  %p3511_p7 = scmp.lt.s32.totalorder %s3509_s28, %s3504_s2 }
  0x4c   : > { %p3507_p13 = pnand %p3505_p0, %p3476_p2  ;;  %p3512_p8 = por %p3511_p7, %p3510_p5 }
  0x4e   : > { %p3508_p3 = pneg %p3507_p13 }
  0x50   : > { %p3513_p9 = pnand %p3512_p8, %p3508_p3 }
  0x52   : > { %3516 = shalt.err (!%p3513_p9)
}
  0x53   : > { %s3673_s18 = smov 768   ;;  %s3674_s27 = smov 48  }
  0x54   : > { %3341 = dma.hbm_to_vmem [thread:$0]  (!%p3829_p12), %s263_s9, 1536, %s265_s23, %s252_s25, %s3673_s18, %s3673_s18, %s3674_s27  }
  0x55   : > { %276 = sbr.rel (%p3781_p11) target bundleno = 447 (0x1bf), region = 36  ;;  %s278_s22 = sand.u32 (!%p3781_p11), 1, %s3656_s11  }
  0x56   : > { %s2288_s15 = sshll.u32 (!%p3781_p11), %s278_s22, 6  ;;  %s279_s30 = scalar_lea.sflag (!%p3781_p11), [#allocation7], %s278_s22 }
  0x57   : > { %s3867_s8 = scalar_lea.vmem (!%p3781_p11), [#allocation6], %s2288_s15 }
  0x5a   : > { %3619 = dma.done.wait (%p3765_p4), %s279_s30, 1024  }
  0x5b   : > { %3621 = vsyncadd (%p3765_p4), %s279_s30, 4294966272  ;;  %s288_s2 = sand.u32 1, %s3755_s14   ;;  %s3318_s10 = smul.u32 96, %s278_s22 }
  0x5c   : > { %s289_s24 = scalar_lea.sflag [#allocation10], %s288_s2 }
  0x5d   : > { %s3874_s21 = scalar_lea.vmem [#allocation9], %s3318_s10 }
  0x5e   : > { %3623 = dma.done.wait (%p3765_p4), %s289_s24, 1536  }
  0x5f   : > { %3625 = vsyncadd (%p3765_p4), %s289_s24, 4294965760 }
  0x60   : > { %3627 = dma.done.wait (%p66_p1), [#allocation10], 24576  }
  0x61   : > { %3629 = vsyncadd (%p66_p1), [#allocation10], 4294942720  ;;  %v2451_v0 = vld [vmem:[#allocation11 + $0xe0] sm:$0xf]  ;;  %v3152_v1 = vld [vmem:[#allocation11 + $0xec] sm:$0xf0] }
  0x62   : > { %v2579_v2 = vld [vmem:[#allocation11 + $0x1e0] sm:$0xf]  ;;  %v2452_v3 = vor.u32 %v3152_v1, %v2451_v0  ;;  %v3184_v4 = vld [vmem:[#allocation11 + $0x1ec] sm:$0xf0]  ;;  %s3884_s16 = sld [smem:[#allocation5]] }
  0x63   : > { %v2707_v5 = vld [vmem:[#allocation11 + $0x2e0] sm:$0xf]  ;;  %v3216_v6 = vld [vmem:[#allocation11 + $0x2ec] sm:$0xf0]  ;;  %v2580_v7 = vor.u32 %v3184_v4, %v2579_v2  ;;  %s3886_s19 = sld [smem:[#allocation5 + $0x1]] }
  0x64   : > { %v2708_v8 = vor.u32 %v3216_v6, %v2707_v5  ;;  %v2835_v9 = vld [vmem:[#allocation11 + $0x3e0] sm:$0xf]  ;;  %v3248_v10 = vld [vmem:[#allocation11 + $0x3ec] sm:$0xf0]  ;;  %1739 = vmatpush.bf16.msra.mxu0 %v2452_v3  ;;  %s3888_s26 = sld [smem:[#allocation5 + $0x2]] }
  0x65   : > { %v2435_v11 = vld [vmem:[#allocation11 + $0xc0] sm:$0xf]  ;;  %v2836_v12 = vor.u32 %v3248_v10, %v2835_v9  ;;  %v3148_v13 = vld [vmem:[#allocation11 + $0xcc] sm:$0xf0]  ;;  %1752 = vmatpush.bf16.msra.mxu1 %v2580_v7  ;;  %s3890_s23 = sld [smem:[#allocation5 + $0x3]] }
  0x66   : > { %v2563_v14 = vld [vmem:[#allocation11 + $0x1c0] sm:$0xf]  ;;  %v3180_v15 = vld [vmem:[#allocation11 + $0x1cc] sm:$0xf0]  ;;  %1765 = vmatpush.bf16.msra.mxu2 %v2708_v8  ;;  %v2436_v16 = vor.u32 %v3148_v13, %v2435_v11  ;;  %s3892_s9 = sld [smem:[#allocation5 + $0x4]] }
  0x67   : > { %v2564_v17 = vor.u32 %v3180_v15, %v2563_v14  ;;  %v2691_v18 = vld [vmem:[#allocation11 + $0x2c0] sm:$0xf]  ;;  %v3212_v19 = vld [vmem:[#allocation11 + $0x2cc] sm:$0xf0]  ;;  %1778 = vmatpush.bf16.msra.mxu3 %v2836_v12  ;;  %s3894_s25 = sld [smem:[#allocation5 + $0x5]] }
  0x68   : > { %v2819_v20 = vld [vmem:[#allocation11 + $0x3c0] sm:$0xf]  ;;  %v2692_v21 = vor.u32 %v3212_v19, %v2691_v18  ;;  %v3244_v22 = vld [vmem:[#allocation11 + $0x3cc] sm:$0xf0]  ;;  %1740 = vmatpush.bf16.msra.mxu0 %v2436_v16  ;;  %s354_s29 = sshra.s32 %s3884_s16, 3  ;;  %s357_s4 = sand.u32 7, %s3884_s16 }
  0x69   : > { %v2419_v23 = vld [vmem:[#allocation11 + $0xa0] sm:$0xf]  ;;  %v3144_v24 = vld [vmem:[#allocation11 + $0xac] sm:$0xf0]  ;;  %v2820_v25 = vor.u32 %v3244_v22, %v2819_v20  ;;  %1753 = vmatpush.bf16.msra.mxu1 %v2564_v17  ;;  %s2294_s12 = smul.u32 48, %s354_s29  ;;  %s383_s28 = sshra.s32 %s3886_s19, 3 }
  0x6a   : > { %v2547_v26 = vld [vmem:[#allocation11 + $0x1a0] sm:$0xf]  ;;  %v3176_v27 = vld [vmem:[#allocation11 + $0x1ac] sm:$0xf0]  ;;  %v2420_v29 = vor.u32 %v3144_v24, %v2419_v23  ;;  %1766 = vmatpush.bf16.msra.mxu2 %v2692_v21  ;;  %s386_s20 = sand.u32 7, %s3886_s19  ;;  %s2300_s13 = smul.u32 48, %s383_s28 }
  0x6b   : > { %v2675_v28 = vld [vmem:[#allocation11 + $0x2a0] sm:$0xf]  ;;  %v3208_v30 = vld [vmem:[#allocation11 + $0x2ac] sm:$0xf0]  ;;  %v2548_v33 = vor.u32 %v3176_v27, %v2547_v26  ;;  %1779 = vmatpush.bf16.msra.mxu3 %v2820_v25  ;;  %s360_s18 = sadd.s32 %s2294_s12, %s357_s4  ;;  %s411_s27 = sshra.s32 %s3888_s26, 3 }
  0x6c   : > { %v2803_v31 = vld [vmem:[#allocation11 + $0x3a0] sm:$0xf]  ;;  %v3240_v32 = vld [vmem:[#allocation11 + $0x3ac] sm:$0xf0]  ;;  %v2676_v34 = vor.u32 %v3208_v30, %v2675_v28  ;;  %1741 = vmatpush.bf16.msra.mxu0 %v2420_v29  ;;  %s361_s22 = scalar_lea.vmem %s3874_s21, %s360_s18 [#allocation9]  ;;  %s389_s15 = sadd.s32 %s2300_s13, %s386_s20 }
  0x6d   : > { %v2403_v35 = vld [vmem:[#allocation11 + $0x80] sm:$0xf]  ;;  %v3140_v36 = vld [vmem:[#allocation11 + $0x8c] sm:$0xf0]  ;;  %v2804_v38 = vor.u32 %v3240_v32, %v2803_v31  ;;  %1754 = vmatpush.bf16.msra.mxu1 %v2548_v33  ;;  %v3150_v33 = vld [vmem:[#allocation11 + $0xe4] sm:$0xf]  ;;  %s390_s30 = scalar_lea.vmem %s3874_s21, %s389_s15 [#allocation9] }
  0x6e   : > { %v2531_v37 = vld [vmem:[#allocation11 + $0x180] sm:$0xf]  ;;  %v3172_v39 = vld [vmem:[#allocation11 + $0x18c] sm:$0xf0]  ;;  %v2404_v44 = vor.u32 %v3140_v36, %v2403_v35  ;;  %1767 = vmatpush.bf16.msra.mxu2 %v2676_v34  ;;  %v2453_v34 = vld [vmem:[#allocation11 + $0xf0] sm:$0xf0] }
  0x6f   : > { %v2659_v40 = vld [vmem:[#allocation11 + $0x280] sm:$0xf]  ;;  %v3204_v41 = vld [vmem:[#allocation11 + $0x28c] sm:$0xf0]  ;;  %v2532_v45 = vor.u32 %v3172_v39, %v2531_v37  ;;  %1780 = vmatpush.bf16.msra.mxu3 %v2804_v38  ;;  %v3182_v37 = vld [vmem:[#allocation11 + $0x1e4] sm:$0xf] }
  0x70   : > { %v2787_v42 = vld [vmem:[#allocation11 + $0x380] sm:$0xf]  ;;  %v3236_v43 = vld [vmem:[#allocation11 + $0x38c] sm:$0xf0]  ;;  %v2660_v46 = vor.u32 %v3204_v41, %v2659_v40  ;;  %1742 = vmatpush.bf16.msra.mxu0 %v2404_v44  ;;  %v2581_v38 = vld [vmem:[#allocation11 + $0x1f0] sm:$0xf0] }
  0x71   : > { %v2387_v47 = vld [vmem:[#allocation11 + $0x60] sm:$0xf]  ;;  %v3136_v48 = vld [vmem:[#allocation11 + $0x6c] sm:$0xf0]  ;;  %v2788_v50 = vor.u32 %v3236_v43, %v2787_v42  ;;  %1755 = vmatpush.bf16.msra.mxu1 %v2532_v45  ;;  %v2456_v42 = vor.u32 %v3150_v33, %v2453_v34  ;;  %s414_s2 = sand.u32 7, %s3888_s26  ;;  %s2306_s10 = smul.u32 48, %s411_s27 }
  0x72   : > { %v2515_v49 = vld [vmem:[#allocation11 + $0x160] sm:$0xf]  ;;  %v3168_v51 = vld [vmem:[#allocation11 + $0x16c] sm:$0xf0]  ;;  %v2388_v56 = vor.u32 %v3136_v48, %v2387_v47  ;;  %1768 = vmatpush.bf16.msra.mxu2 %v2660_v46  ;;  %v2584_v46 = vor.u32 %v3182_v37, %v2581_v38  ;;  %v3146_v48 = vld [vmem:[#allocation11 + $0xc4] sm:$0xf] }
  0x73   : > { %v2643_v52 = vld [vmem:[#allocation11 + $0x260] sm:$0xf]  ;;  %v3200_v53 = vld [vmem:[#allocation11 + $0x26c] sm:$0xf0]  ;;  %v2516_v57 = vor.u32 %v3168_v51, %v2515_v49  ;;  %1781 = vmatpush.bf16.msra.mxu3 %v2788_v50  ;;  %v2437_v49 = vld [vmem:[#allocation11 + $0xd0] sm:$0xf0]  ;;  %s417_s19 = sadd.s32 %s2306_s10, %s414_s2 }
  0x74   : > { %v2771_v54 = vld [vmem:[#allocation11 + $0x360] sm:$0xf]  ;;  %v3232_v55 = vld [vmem:[#allocation11 + $0x36c] sm:$0xf0]  ;;  %v2644_v58 = vor.u32 %v3200_v53, %v2643_v52  ;;  %1743 = vmatpush.bf16.msra.mxu0 %v2388_v56  ;;  %v3178_v50 = vld [vmem:[#allocation11 + $0x1c4] sm:$0xf]  ;;  %s418_s29 = scalar_lea.vmem %s3874_s21, %s417_s19 [#allocation9] }
  0x75   : > { %v2371_v59 = vld [vmem:[#allocation11 + $0x40] sm:$0xf]  ;;  %v3132_v60 = vld [vmem:[#allocation11 + $0x4c] sm:$0xf0]  ;;  %v2772_v62 = vor.u32 %v3232_v55, %v2771_v54  ;;  %1756 = vmatpush.bf16.msra.mxu1 %v2516_v57  ;;  %v2565_v51 = vld [vmem:[#allocation11 + $0x1d0] sm:$0xf0]  ;;  %v2440_v55 = vor.u32 %v3146_v48, %v2437_v49 }
  0x76   : > { %v2499_v61 = vld [vmem:[#allocation11 + $0x140] sm:$0xf]  ;;  %v3164_v63 = vld [vmem:[#allocation11 + $0x14c] sm:$0xf0]  ;;  %v2372_v4 = vor.u32 %v3132_v60, %v2371_v59  ;;  %1769 = vmatpush.bf16.msra.mxu2 %v2644_v58  ;;  %v2568_v59 = vor.u32 %v3178_v50, %v2565_v51  ;;  %v3142_v60 = vld [vmem:[#allocation11 + $0xa4] sm:$0xf] }
  0x77   : > { %v2627_v0 = vld [vmem:[#allocation11 + $0x240] sm:$0xf]  ;;  %v3196_v1 = vld [vmem:[#allocation11 + $0x24c] sm:$0xf0]  ;;  %v2500_v5 = vor.u32 %v3164_v63, %v2499_v61  ;;  %1782 = vmatpush.bf16.msra.mxu3 %v2772_v62  ;;  %v2421_v61 = vld [vmem:[#allocation11 + $0xb0] sm:$0xf0] }
  0x78   : > { %v2755_v2 = vld [vmem:[#allocation11 + $0x340] sm:$0xf]  ;;  %v3228_v3 = vld [vmem:[#allocation11 + $0x34c] sm:$0xf0]  ;;  %v2628_v6 = vor.u32 %v3196_v1, %v2627_v0  ;;  %1744 = vmatpush.bf16.msra.mxu0 %v2372_v4  ;;  %v3174_v62 = vld [vmem:[#allocation11 + $0x1a4] sm:$0xf] }
  0x79   : > { %v2355_v7 = vld [vmem:[#allocation11 + $0x20] sm:$0xf]  ;;  %v3128_v8 = vld [vmem:[#allocation11 + $0x2c] sm:$0xf0]  ;;  %v2756_v10 = vor.u32 %v3228_v3, %v2755_v2  ;;  %1757 = vmatpush.bf16.msra.mxu1 %v2500_v5  ;;  %v2549_v63 = vld [vmem:[#allocation11 + $0x1b0] sm:$0xf0]  ;;  %v347_v5 = vlaneseq }
  0x7a   : > { %v2483_v9 = vld [vmem:[#allocation11 + $0x120] sm:$0xf]  ;;  %v3160_v11 = vld [vmem:[#allocation11 + $0x12c] sm:$0xf0]  ;;  %v2356_v16 = vor.u32 %v3128_v8, %v2355_v7  ;;  %1770 = vmatpush.bf16.msra.mxu2 %v2628_v6  ;;  %v2424_v7 = vor.u32 %v3142_v60, %v2421_v61  ;;  %v3138_v8 = vld [vmem:[#allocation11 + $0x84] sm:$0xf] }
  0x7b   : > { %v2611_v12 = vld [vmem:[#allocation11 + $0x220] sm:$0xf]  ;;  %v3192_v13 = vld [vmem:[#allocation11 + $0x22c] sm:$0xf0]  ;;  %v2484_v19 = vor.u32 %v3160_v11, %v2483_v9  ;;  %1783 = vmatpush.bf16.msra.mxu3 %v2756_v10  ;;  %v2405_v9 = vld [vmem:[#allocation11 + $0x90] sm:$0xf0]  ;;  %v2552_v10 = vor.u32 %v3174_v62, %v2549_v63 }
  0x7c   : > { %v2739_v14 = vld [vmem:[#allocation11 + $0x320] sm:$0xf]  ;;  %v3224_v15 = vld [vmem:[#allocation11 + $0x32c] sm:$0xf0]  ;;  %v2612_v20 = vor.u32 %v3192_v13, %v2611_v12  ;;  %1745 = vmatpush.bf16.msra.mxu0 %v2356_v16  ;;  %v3170_v11 = vld [vmem:[#allocation11 + $0x184] sm:$0xf] }
  0x7d   : > { %v2339_v17 = vld [vmem:[#allocation11] sm:$0xf]  ;;  %v3124_v18 = vld [vmem:[#allocation11 + $0xc] sm:$0xf0]  ;;  %v2740_v24 = vor.u32 %v3224_v15, %v2739_v14  ;;  %1758 = vmatpush.bf16.msra.mxu1 %v2484_v19  ;;  %v2533_v12 = vld [vmem:[#allocation11 + $0x190] sm:$0xf0] }
  0x7e   : > { %v2467_v21 = vld [vmem:[#allocation11 + $0x100] sm:$0xf]  ;;  %v3156_v22 = vld [vmem:[#allocation11 + $0x10c] sm:$0xf0]  ;;  %v2340_v31 = vor.u32 %v3124_v18, %v2339_v17  ;;  %1771 = vmatpush.bf16.msra.mxu2 %v2612_v20  ;;  %v3134_v18 = vld [vmem:[#allocation11 + $0x64] sm:$0xf] }
  0x7f   : > { %v2595_v23 = vld [vmem:[#allocation11 + $0x200] sm:$0xf]  ;;  %v3188_v25 = vld [vmem:[#allocation11 + $0x20c] sm:$0xf0]  ;;  %v2468_v35 = vor.u32 %v3156_v22, %v2467_v21  ;;  %1784 = vmatpush.bf16.msra.mxu3 %v2740_v24  ;;  %v2389_v19 = vld [vmem:[#allocation11 + $0x70] sm:$0xf0]  ;;  %v2408_v22 = vor.u32 %v3138_v8, %v2405_v9 }
  0x80   : > { %v2723_v26 = vld [vmem:[#allocation11 + $0x300] sm:$0xf]  ;;  %v3220_v27 = vld [vmem:[#allocation11 + $0x30c] sm:$0xf0]  ;;  %v2596_v36 = vor.u32 %v3188_v25, %v2595_v23  ;;  %1746 = vmatpush.bf16.msra.mxu0 %v2340_v31  ;;  %vm3903_vm0 = vcmp.lt.s32.totalorder %v347_v5, 768  ;;  %s439_s24 = sshra.s32 %s3890_s23, 3 }
  0x81   : > { %v2963_v28 = vld [vmem:[#allocation11 + $0x4e0] sm:$0xf]  ;;  %v3280_v29 = vld [vmem:[#allocation11 + $0x4ec] sm:$0xf0]  ;;  %v2724_v39 = vor.u32 %v3220_v27, %v2723_v26  ;;  %1759 = vmatpush.bf16.msra.mxu1 %v2468_v35  ;;  %v3166_v23 = vld [vmem:[#allocation11 + $0x164] sm:$0xf]  ;;  %v2536_v27 = vor.u32 %v3170_v11, %v2533_v12 }
  0x82   : > { %v3091_v30 = vld [vmem:[#allocation11 + $0x5e0] sm:$0xf]  ;;  %v3312_v32 = vld [vmem:[#allocation11 + $0x5ec] sm:$0xf0]  ;;  %v2964_v40 = vor.u32 %v3280_v29, %v2963_v28  ;;  %1772 = vmatpush.bf16.msra.mxu2 %v2596_v36  ;;  %v2517_v24 = vld [vmem:[#allocation11 + $0x170] sm:$0xf0] }
  0x83   : > { %v3092_v41 = vor.u32 %v3312_v32, %v3091_v30  ;;  %v2947_v43 = vld [vmem:[#allocation11 + $0x4c0] sm:$0xf]  ;;  %v3276_v44 = vld [vmem:[#allocation11 + $0x4cc] sm:$0xf0]  ;;  %1785 = vmatpush.bf16.msra.mxu3 %v2724_v39  ;;  %v3130_v37 = vld [vmem:[#allocation11 + $0x44] sm:$0xf] }
  0x84   : > { %v3075_v45 = vld [vmem:[#allocation11 + $0x5c0] sm:$0xf]  ;;  %v3308_v47 = vld [vmem:[#allocation11 + $0x5cc] sm:$0xf0]  ;;  %1791 = vmatpush.bf16.msrb.mxu0 %v2964_v40  ;;  %v2948_v52 = vor.u32 %v3276_v44, %v2947_v43  ;;  %v2373_v38 = vld [vmem:[#allocation11 + $0x50] sm:$0xf0]  ;;  %v2392_v40 = vor.u32 %v3134_v18, %v2389_v19 }
  0x85   : > { %v2931_v53 = vld [vmem:[#allocation11 + $0x4a0] sm:$0xf]  ;;  %1804 = vmatpush.bf16.msrb.mxu1 %v3092_v41  ;;  %v3076_v54 = vor.u32 %v3308_v47, %v3075_v45  ;;  %v3272_v56 = vld [vmem:[#allocation11 + $0x4ac] sm:$0xf0]  ;;  %s442_s16 = sand.u32 7, %s3890_s23  ;;  %s2312_s26 = smul.u32 48, %s439_s24  ;;  %v2376_v49 = vor.u32 %v3130_v37, %v2373_v38 }
  0x86   : > { %1817 = vmatpush.bf16.msrb.mxu2 %v2456_v42  ;;  %v3059_v57 = vld [vmem:[#allocation11 + $0x5a0] sm:$0xf]  ;;  %v3304_v58 = vld [vmem:[#allocation11 + $0x5ac] sm:$0xf0]  ;;  %v2932_v2 = vor.u32 %v3272_v56, %v2931_v53  ;;  %v3162_v41 = vld [vmem:[#allocation11 + $0x144] sm:$0xf]  ;;  %v2520_v42 = vor.u32 %v3166_v23, %v2517_v24 }
  0x87   : > { %1830 = vmatpush.bf16.msrb.mxu3 %v2584_v46  ;;  %v2915_v0 = vld [vmem:[#allocation11 + $0x480] sm:$0xf]  ;;  %v3268_v1 = vld [vmem:[#allocation11 + $0x48c] sm:$0xf0]  ;;  %v3060_v6 = vor.u32 %v3304_v58, %v3059_v57  ;;  %v2501_v43 = vld [vmem:[#allocation11 + $0x150] sm:$0xf0]  ;;  %s445_s23 = sadd.s32 %s2312_s26, %s442_s16 }
  0x88   : > { %1792 = vmatpush.bf16.msrb.mxu0 %v2948_v52  ;;  %v3043_v3 = vld [vmem:[#allocation11 + $0x580] sm:$0xf]  ;;  %v3300_v4 = vld [vmem:[#allocation11 + $0x58c] sm:$0xf0]  ;;  %v2916_v15 = vor.u32 %v3268_v1, %v2915_v0  ;;  %s467_s4 = sshra.s32 %s3892_s9, 3  ;;  %s446_s12 = scalar_lea.vmem %s3874_s21, %s445_s23 [#allocation9]  ;;  %v2504_v52 = vor.u32 %v3162_v41, %v2501_v43  ;;  %vm4077_vm1 = vcmp.lt.s32.totalorder %v347_v5, 512 }
  0x89   : > { %1805 = vmatpush.bf16.msrb.mxu1 %v3076_v54  ;;  %v2899_v13 = vld [vmem:[#allocation11 + $0x460] sm:$0xf]  ;;  %v3264_v14 = vld [vmem:[#allocation11 + $0x46c] sm:$0xf0]  ;;  %v3044_v21 = vor.u32 %v3300_v4, %v3043_v3  ;;  %s470_s28 = sand.u32 7, %s3892_s9  ;;  %s2318_s20 = smul.u32 48, %s467_s4 }
  0x8a   : > { %1818 = vmatpush.bf16.msrb.mxu2 %v2440_v55  ;;  %v3027_v16 = vld [vmem:[#allocation11 + $0x560] sm:$0xf]  ;;  %v3296_v17 = vld [vmem:[#allocation11 + $0x56c] sm:$0xf0]  ;;  %v2900_v34 = vor.u32 %v3264_v14, %v2899_v13  ;;  %s495_s13 = sshra.s32 %s3894_s25, 3  ;;  %s498_s18 = sand.u32 7, %s3894_s25 }
  0x8b   : > { %1831 = vmatpush.bf16.msrb.mxu3 %v2568_v59  ;;  %v362_v25 = vld [vmem:[%s361_s22] ss:$8 sm:$0xf]  ;;  %v3028_v39 = vor.u32 %v3296_v17, %v3027_v16  ;;  %s2324_s9 = smul.u32 48, %s495_s13  ;;  %s473_s27 = sadd.s32 %s2318_s20, %s470_s28  ;;  %v2357_v3 = vld [vmem:[#allocation11 + $0x30] sm:$0xf0] }
  0x8c   : > { %1793 = vmatpush.bf16.msrb.mxu0 %v2932_v2  ;;  %v363_v26 = vld [vmem:[%s361_s22] ss:$8 sm:$0x30]  ;;  %v2883_v31 = vld [vmem:[#allocation11 + $0x440] sm:$0xf]  ;;  %s3931_s22 = sld [smem:[#allocation5 + $0x6]]  ;;  %s474_s15 = scalar_lea.vmem %s3874_s21, %s473_s27 [#allocation9] }
  0x8d   : > { %1806 = vmatpush.bf16.msrb.mxu1 %v3060_v6  ;;  %v364_v28 = vor.u32 %v363_v26, %v362_v25  ;;  %v391_v29 = vld [vmem:[%s390_s30] ss:$8 sm:$0xf]  ;;  %s3937_s2 = sld [smem:[#allocation5 + $0x7]]  ;;  %v3126_v2 = vld [vmem:[#allocation11 + $0x24] sm:$0xf] }
  0x8e   : > { %1819 = vmatpush.bf16.msrb.mxu2 %v2424_v7  ;;  %v392_v30 = vld [vmem:[%s390_s30] ss:$8 sm:$0x30]  ;;  %v3011_v35 = vld [vmem:[#allocation11 + $0x540] sm:$0xf]  ;;  %s501_s30 = sadd.s32 %s2324_s9, %s498_s18  ;;  %v2360_v4 = vor.u32 %v3126_v2, %v2357_v3  ;;  %s3992_s20 = sld [smem:[#allocation4]] }
  0x8f   : > { %1832 = vmatpush.bf16.msrb.mxu3 %v2552_v10  ;;  %v3260_v32 = vld [vmem:[#allocation11 + $0x44c] sm:$0xf0]  ;;  %v393_v33 = vor.u32 %v392_v30, %v391_v29  ;;  %367 = vst.msk [vmem:[#allocation2] ss:$8 sm:$0xf] %vm3903_vm0, %v364_v28  ;;  %s502_s25 = scalar_lea.vmem %s3874_s21, %s501_s30 [#allocation9]  ;;  %s3994_s13 = sld [smem:[#allocation4 + $0x1]] }
  0x90   : > { %1794 = vmatpush.bf16.msrb.mxu0 %v2916_v15  ;;  %v3292_v36 = vld [vmem:[#allocation11 + $0x54c] sm:$0xf0]  ;;  %368 = vst.msk [vmem:[#allocation2] ss:$8 sm:$0x30] %vm3903_vm0, %v364_v28  ;;  %v2884_v46 = vor.u32 %v3260_v32, %v2883_v31  ;;  %s3998_s27 = sld [smem:[#allocation4 + $0x2]] }
  0x91   : > { %1807 = vmatpush.bf16.msrb.mxu1 %v3044_v21  ;;  %395 = vst.msk [vmem:[#allocation2 + $0x1] ss:$8 sm:$0xf] %vm3903_vm0, %v393_v33  ;;  %v419_v44 = vld [vmem:[%s418_s29] ss:$8 sm:$0xf]  ;;  %v3012_v48 = vor.u32 %v3292_v36, %v3011_v35 }
  0x92   : > { %1820 = vmatpush.bf16.msrb.mxu2 %v2408_v22  ;;  %v420_v45 = vld [vmem:[%s418_s29] ss:$8 sm:$0x30]  ;;  %396 = vst.msk [vmem:[#allocation2 + $0x1] ss:$8 sm:$0x30] %vm3903_vm0, %v393_v33 }
  0x93   : > { %1833 = vmatpush.bf16.msrb.mxu3 %v2536_v27  ;;  %v421_v47 = vor.u32 %v420_v45, %v419_v44  ;;  %v447_v50 = vld [vmem:[%s446_s12] ss:$8 sm:$0xf]  ;;  %s523_s10 = sshra.s32 %s3931_s22, 3  ;;  %s526_s24 = sand.u32 7, %s3931_s22 }
  0x94   : > { %1795 = vmatpush.bf16.msrb.mxu0 %v2900_v34  ;;  %v448_v51 = vld [vmem:[%s446_s12] ss:$8 sm:$0x30]  ;;  %v2867_v54 = vld [vmem:[#allocation11 + $0x420] sm:$0xf]  ;;  %s2330_s16 = smul.u32 48, %s523_s10 }
  0x95   : > { %1808 = vmatpush.bf16.msrb.mxu1 %v3028_v39  ;;  %423 = vst.msk [vmem:[#allocation2 + $0x2] ss:$8 sm:$0xf] %vm3903_vm0, %v421_v47  ;;  %v449_v53 = vor.u32 %v448_v51, %v447_v50  ;;  %v475_v55 = vld [vmem:[%s474_s15] ss:$8 sm:$0xf] }
  0x96   : > { %1821 = vmatpush.bf16.msrb.mxu2 %v2392_v40  ;;  %424 = vst.msk [vmem:[#allocation2 + $0x2] ss:$8 sm:$0x30] %vm3903_vm0, %v421_v47  ;;  %v476_v56 = vld [vmem:[%s474_s15] ss:$8 sm:$0x30]  ;;  %s529_s19 = sadd.s32 %s2330_s16, %s526_s24 }
  0x97   : > { %1834 = vmatpush.bf16.msrb.mxu3 %v2520_v42  ;;  %451 = vst.msk [vmem:[#allocation2 + $0x3] ss:$8 sm:$0xf] %vm3903_vm0, %v449_v53  ;;  %v477_v57 = vor.u32 %v476_v56, %v475_v55  ;;  %v503_v58 = vld [vmem:[%s502_s25] ss:$8 sm:$0xf]  ;;  %s530_s26 = scalar_lea.vmem %s3874_s21, %s529_s19 [#allocation9] }
  0x98   : > { %1796 = vmatpush.bf16.msrb.mxu0 %v2884_v46  ;;  %452 = vst.msk [vmem:[#allocation2 + $0x3] ss:$8 sm:$0x30] %vm3903_vm0, %v449_v53  ;;  %v504_v59 = vld [vmem:[%s502_s25] ss:$8 sm:$0x30] }
  0x99   : > { %1809 = vmatpush.bf16.msrb.mxu1 %v3012_v48  ;;  %v505_v60 = vor.u32 %v504_v59, %v503_v58  ;;  %v3256_v61 = vld [vmem:[#allocation11 + $0x42c] sm:$0xf0]  ;;  %v2995_v62 = vld [vmem:[#allocation11 + $0x520] sm:$0xf]  ;;  %v3158_v6 = vld [vmem:[#allocation11 + $0x124] sm:$0xf] }
  0x9a   : > { %1822 = vmatpush.bf16.msrb.mxu2 %v2376_v49  ;;  %479 = vst.msk [vmem:[#allocation2 + $0x4] ss:$8 sm:$0xf] %vm3903_vm0, %v477_v57  ;;  %v2868_v63 = vor.u32 %v3256_v61, %v2867_v54  ;;  %v3288_v0 = vld [vmem:[#allocation11 + $0x52c] sm:$0xf0]  ;;  %s551_s29 = sshra.s32 %s3937_s2, 3 }
  0x9b   : > { %1835 = vmatpush.bf16.msrb.mxu3 %v2504_v52  ;;  %507 = vst.msk [vmem:[#allocation2 + $0x5] ss:$8 sm:$0xf] %vm3903_vm0, %v505_v60  ;;  %v2996_v1 = vor.u32 %v3288_v0, %v2995_v62  ;;  %v2485_v7 = vld [vmem:[#allocation11 + $0x130] sm:$0xf0]  ;;  %s554_s4 = sand.u32 7, %s3937_s2 }
  0x9c   : > { %480 = vst.msk [vmem:[#allocation2 + $0x4] ss:$8 sm:$0x30] %vm3903_vm0, %v477_v57  ;;  %1797 = vmatpush.bf16.msrb.mxu0 %v2868_v63  ;;  %v2851_v8 = vld [vmem:[#allocation11 + $0x400] sm:$0xf]  ;;  %v2488_v9 = vor.u32 %v3158_v6, %v2485_v7  ;;  %s2336_s23 = smul.u32 48, %s551_s29 }
  0x9d   : > { %508 = vst.msk [vmem:[#allocation2 + $0x5] ss:$8 sm:$0x30] %vm3903_vm0, %v505_v60  ;;  %1810 = vmatpush.bf16.msrb.mxu1 %v2996_v1  ;;  %v3252_v10 = vld [vmem:[#allocation11 + $0x40c] sm:$0xf0]  ;;  %s338_s9 = sshra.s32 %s3992_s20, 3 }
  0x9e   : > { %v2979_v11 = vld [vmem:[#allocation11 + $0x500] sm:$0xf]  ;;  %v532_v13 = vld [vmem:[%s530_s26] ss:$8 sm:$0x30]  ;;  %1823 = vmatpush.bf16.msrb.mxu2 %v2360_v4  ;;  %v2852_v14 = vor.u32 %v3252_v10, %v2851_v8  ;;  %s557_s12 = sadd.s32 %s2336_s23, %s554_s4  ;;  %s341_s22 = sand.u32 7, %s3992_s20 }
  0x9f   : > { %v531_v12 = vld [vmem:[%s530_s26] ss:$8 sm:$0xf]  ;;  %1836 = vmatpush.bf16.msrb.mxu3 %v2488_v9  ;;  %v3122_v17 = vld [vmem:[#allocation11 + $0x4] sm:$0xf]  ;;  %s558_s28 = scalar_lea.vmem %s3874_s21, %s557_s12 [#allocation9]  ;;  %s3990_s21 = sand.u32 1, %s3644_s1  }
  0xa0   : > { %v533_v15 = vor.u32 %v532_v13, %v531_v12  ;;  %v3284_v16 = vld [vmem:[#allocation11 + $0x50c] sm:$0xf0]  ;;  %1798 = vmatpush.bf16.msrb.mxu0 %v2852_v14  ;;  %v2341_v19 = vld [vmem:[#allocation11 + $0x10] sm:$0xf0]  ;;  %v3154_v21 = vld [vmem:[#allocation11 + $0x104] sm:$0xf] }
  0xa1   : > { %v2980_v18 = vor.u32 %v3284_v16, %v2979_v11  ;;  %v2469_v22 = vld [vmem:[#allocation11 + $0x110] sm:$0xf0]  ;;  %v2344_v23 = vor.u32 %v3122_v17, %v2341_v19  ;;  %v559_v25 = vld [vmem:[%s558_s28] ss:$8 sm:$0xf]  ;;  %s370_s15 = sshra.s32 %s3994_s13, 3 }
  0xa2   : > { %535 = vst.msk [vmem:[#allocation2 + $0x6] ss:$8 sm:$0xf] %vm3903_vm0, %v533_v15  ;;  %v2472_v24 = vor.u32 %v3154_v21, %v2469_v22  ;;  %v560_v26 = vld [vmem:[%s558_s28] ss:$8 sm:$0x30] }
  0xa3   : > { %536 = vst.msk [vmem:[#allocation2 + $0x6] ss:$8 sm:$0x30] %vm3903_vm0, %v533_v15  ;;  %1811 = vmatpush.bf16.msrb.mxu1 %v2980_v18  ;;  %1824 = vmatpush.bf16.msrb.mxu2 %v2344_v23  ;;  %v561_v27 = vor.u32 %v560_v26, %v559_v25  ;;  %v3214_v28 = vld [vmem:[#allocation11 + $0x2e4] sm:$0xf]  ;;  %s4002_s30 = sld [smem:[#allocation4 + $0x3]] }
  0xa4   : > { %1837 = vmatpush.bf16.msrb.mxu3 %v2472_v24  ;;  %v2709_v29 = vld [vmem:[#allocation11 + $0x2f0] sm:$0xf0]  ;;  %v3246_v30 = vld [vmem:[#allocation11 + $0x3e4] sm:$0xf]  ;;  %s4006_s25 = sshll.u32 %s338_s9, 5  ;;  %s373_s2 = sand.u32 7, %s3994_s13 }
  0xa5   : > { %563 = vst.msk [vmem:[#allocation2 + $0x7] ss:$8 sm:$0xf] %vm3903_vm0, %v561_v27  ;;  %v2837_v31 = vld [vmem:[#allocation11 + $0x3f0] sm:$0xf0]  ;;  %v2712_v39 = vor.u32 %v3214_v28, %v2709_v29  ;;  %s4011_s10 = sshll.u32 %s370_s15, 5  ;;  %s4034_s9 = sadd.s32 %s4006_s25, %s341_s22 }
  0xa6   : > { %564 = vst.msk [vmem:[#allocation2 + $0x7] ss:$8 sm:$0x30] %vm3903_vm0, %v561_v27  ;;  %v3278_v32 = vld [vmem:[#allocation11 + $0x4e4] sm:$0xf]  ;;  %v2840_v43 = vor.u32 %v3246_v30, %v2837_v31  ;;  %s398_s24 = sshra.s32 %s3998_s27, 3  ;;  %s4039_s15 = sadd.s32 %s4011_s10, %s373_s2 }
  0xa7   : > { %v2965_v33 = vld [vmem:[#allocation11 + $0x4f0] sm:$0xf0]  ;;  %v3310_v34 = vld [vmem:[#allocation11 + $0x5e4] sm:$0xf]  ;;  %s401_s16 = sand.u32 7, %s3998_s27  ;;  %s4015_s19 = sld [smem:[#allocation4 + $0x4]] }
  0xa8   : > { %v3093_v35 = vld [vmem:[#allocation11 + $0x5f0] sm:$0xf0]  ;;  %v3210_v44 = vld [vmem:[#allocation11 + $0x2c4] sm:$0xf]  ;;  %v2968_v47 = vor.u32 %v3278_v32, %v2965_v33  ;;  %s4017_s26 = sshll.u32 %s398_s24, 5  ;;  %s4025_s23 = sld [smem:[#allocation4 + $0x5]] }
  0xa9   : > { %v2693_v45 = vld [vmem:[#allocation11 + $0x2d0] sm:$0xf0]  ;;  %v3096_v48 = vor.u32 %v3310_v34, %v3093_v35  ;;  %v3242_v49 = vld [vmem:[#allocation11 + $0x3c4] sm:$0xf]  ;;  %s426_s29 = sshra.s32 %s4002_s30, 3  ;;  %s429_s4 = sand.u32 7, %s4002_s30 }
  0xaa   : > { %v2821_v50 = vld [vmem:[#allocation11 + $0x3d0] sm:$0xf0]  ;;  %v3274_v51 = vld [vmem:[#allocation11 + $0x4c4] sm:$0xf]  ;;  %v2696_v55 = vor.u32 %v3210_v44, %v2693_v45  ;;  %s4027_s12 = sld [smem:[#allocation4 + $0x6]]  ;;  %s4043_s24 = sshll.u32 %s426_s29, 5 }
  0xab   : > { %v2949_v52 = vld [vmem:[#allocation11 + $0x4d0] sm:$0xf0]  ;;  %v3306_v53 = vld [vmem:[#allocation11 + $0x5c4] sm:$0xf]  ;;  %v2824_v56 = vor.u32 %v3242_v49, %v2821_v50  ;;  %s4029_s28 = sld [smem:[#allocation4 + $0x7]]  ;;  %s345_s20 = scalar_lea.vmem %s3867_s8, %s4034_s9 [#allocation6] }
  0xac   : > { %v565_v36 = vld [vmem:[#allocation2] sm:$0xff]  ;;  %v567_v37 = vld [vmem:[#allocation2 + $0x10] sm:$0xff]  ;;  %v568_v38 = vld [vmem:[#allocation2 + $0x18] sm:$0xff]  ;;  %v2952_v59 = vor.u32 %v3274_v51, %v2949_v52  ;;  %s377_s13 = scalar_lea.vmem %s3867_s8, %s4039_s15 [#allocation6]  ;;  %s4054_s2 = sadd.s32 %s4017_s26, %s401_s16 }
  0xad   : > { %v3961_v40 = vpack.c.bf16 %v565_v36, %v565_v36  ;;  %v3963_v41 = vpack.c.bf16 %v567_v37, %v567_v37  ;;  %v3965_v42 = vpack.c.bf16 %v568_v38, %v568_v38  ;;  %v566_v20 = vld [vmem:[#allocation2 + $0x8] sm:$0xff]  ;;  %v3077_v54 = vld [vmem:[#allocation11 + $0x5d0] sm:$0xf0]  ;;  %v3206_v57 = vld [vmem:[#allocation11 + $0x2a4] sm:$0xf]  ;;  %s454_s18 = sshra.s32 %s4015_s19, 3  ;;  %s4060_s29 = sadd.s32 %s4043_s24, %s429_s4 }
  0xae   : > { %v3967_v46 = vpack.c.bf16 %v566_v20, %v566_v20  ;;  %v2677_v58 = vld [vmem:[#allocation11 + $0x2b0] sm:$0xf0]  ;;  %v3080_v60 = vor.u32 %v3306_v53, %v3077_v54  ;;  %v3238_v61 = vld [vmem:[#allocation11 + $0x3a4] sm:$0xf]  ;;  %v570_v17 = vld [vmem:[#allocation2 + $0x28] sm:$0xff]  ;;  %s457_s22 = sand.u32 7, %s4015_s19 }
  0xaf   : > { %1747 = vmatmul.bf16.vlgmr.msra.gmra.mxu0 %v3961_v40  ;;  %1773 = vmatmul.bf16.vlgmr.msra.gmra.mxu2 %v3963_v41  ;;  %v2805_v62 = vld [vmem:[#allocation11 + $0x3b0] sm:$0xf0]  ;;  %v3270_v63 = vld [vmem:[#allocation11 + $0x4a4] sm:$0xf]  ;;  %v2680_v3 = vor.u32 %v3206_v57, %v2677_v58  ;;  %v3975_v32 = vpack.c.bf16 %v570_v17, %v570_v17  ;;  %v2843_v17 = vld [vmem:[#allocation11 + $0x3e8] sm:$0xf] }
  0xb0   : > { %1786 = vmatmul.bf16.vlgmr.msra.gmra.mxu3 %v3965_v42  ;;  %1760 = vmatmul.bf16.vlgmr.msra.gmra.mxu1 %v3967_v46  ;;  %v2933_v0 = vld [vmem:[#allocation11 + $0x4b0] sm:$0xf0]  ;;  %v3302_v1 = vld [vmem:[#allocation11 + $0x5a4] sm:$0xf]  ;;  %v2808_v4 = vor.u32 %v3238_v61, %v2805_v62  ;;  %s3118_s25 = sshll.u32 %s454_s18, 5  ;;  %s482_s10 = sshra.s32 %s4025_s23, 3 }
  0xb1   : > { %1843 = vmatpush.bf16.msra.mxu0 %v2712_v39  ;;  %1856 = vmatpush.bf16.msra.mxu1 %v2840_v43  ;;  %v3061_v2 = vld [vmem:[#allocation11 + $0x5b0] sm:$0xf0]  ;;  %v3202_v6 = vld [vmem:[#allocation11 + $0x284] sm:$0xf]  ;;  %v2936_v8 = vor.u32 %v3270_v63, %v2933_v0  ;;  %s510_s19 = sshra.s32 %s4027_s12, 3  ;;  %s4063_s18 = sadd.s32 %s3118_s25, %s457_s22 }
  0xb2   : > { %1869 = vmatpush.bf16.msra.mxu2 %v2968_v47  ;;  %1882 = vmatpush.bf16.msra.mxu3 %v3096_v48  ;;  %v2661_v7 = vld [vmem:[#allocation11 + $0x290] sm:$0xf0]  ;;  %v3064_v9 = vor.u32 %v3302_v1, %v3061_v2  ;;  %v3234_v10 = vld [vmem:[#allocation11 + $0x384] sm:$0xf]  ;;  %s538_s27 = sshra.s32 %s4029_s28, 3  ;;  %s485_s16 = sand.u32 7, %s4025_s23 }
  0xb3   : > { %v2789_v11 = vld [vmem:[#allocation11 + $0x390] sm:$0xf0]  ;;  %v3266_v12 = vld [vmem:[#allocation11 + $0x484] sm:$0xf]  ;;  %v2664_v18 = vor.u32 %v3202_v6, %v2661_v7  ;;  %s3119_s26 = sshll.u32 %s482_s10, 5  ;;  %s513_s30 = sand.u32 7, %s4027_s12 }
  0xb4   : > { %v2917_v13 = vld [vmem:[#allocation11 + $0x490] sm:$0xf0]  ;;  %v3298_v14 = vld [vmem:[#allocation11 + $0x584] sm:$0xf]  ;;  %v2792_v19 = vor.u32 %v3234_v10, %v2789_v11  ;;  %v3153_v10 = vld [vmem:[#allocation11 + $0xf4] sm:$0xf0]  ;;  %s405_s23 = scalar_lea.vmem %s3867_s8, %s4054_s2 [#allocation6]  ;;  %s4071_s12 = sadd.s32 %s3119_s26, %s485_s16 }
  0xb5   : > { %1844 = vmatpush.bf16.msra.mxu0 %v2696_v55  ;;  %1857 = vmatpush.bf16.msra.mxu1 %v2824_v56  ;;  %v3045_v15 = vld [vmem:[#allocation11 + $0x590] sm:$0xf0]  ;;  %v3198_v21 = vld [vmem:[#allocation11 + $0x264] sm:$0xf]  ;;  %v2920_v23 = vor.u32 %v3266_v12, %v2917_v13  ;;  %v2587_v11 = vld [vmem:[#allocation11 + $0x1e8] sm:$0xf]  ;;  %s461_s9 = scalar_lea.vmem %s3867_s8, %s4063_s18 [#allocation6]  ;;  %s489_s15 = scalar_lea.vmem %s3867_s8, %s4071_s12 [#allocation6] }
  0xb6   : > { %1870 = vmatpush.bf16.msra.mxu2 %v2952_v59  ;;  %1883 = vmatpush.bf16.msra.mxu3 %v3080_v60  ;;  %v569_v16 = vld [vmem:[#allocation2 + $0x20] sm:$0xff]  ;;  %v3048_v24 = vor.u32 %v3298_v14, %v3045_v15  ;;  %v3230_v25 = vld [vmem:[#allocation11 + $0x364] sm:$0xf]  ;;  %v3185_v12 = vld [vmem:[#allocation11 + $0x1f4] sm:$0xf0]  ;;  %s3120_s4 = sshll.u32 %s510_s19, 5 }
  0xb7   : > { %v2645_v22 = vld [vmem:[#allocation11 + $0x270] sm:$0xf0]  ;;  %v3262_v27 = vld [vmem:[#allocation11 + $0x464] sm:$0xf]  ;;  %v3973_v28 = vpack.c.bf16 %v569_v16, %v569_v16  ;;  %v2715_v13 = vld [vmem:[#allocation11 + $0x2e8] sm:$0xf]  ;;  %s4083_s25 = sadd.s32 %s3120_s4, %s513_s30 }
  0xb8   : > { %v2773_v26 = vld [vmem:[#allocation11 + $0x370] sm:$0xf0]  ;;  %v3294_v30 = vld [vmem:[#allocation11 + $0x564] sm:$0xf]  ;;  %v2648_v33 = vor.u32 %v3198_v21, %v2645_v22  ;;  %v3217_v16 = vld [vmem:[#allocation11 + $0x2f4] sm:$0xf0] }
  0xb9   : > { %1845 = vmatpush.bf16.msra.mxu0 %v2680_v3  ;;  %1858 = vmatpush.bf16.msra.mxu1 %v2808_v4  ;;  %v2901_v29 = vld [vmem:[#allocation11 + $0x470] sm:$0xf0]  ;;  %v2776_v34 = vor.u32 %v3230_v25, %v2773_v26  ;;  %v3194_v35 = vld [vmem:[#allocation11 + $0x244] sm:$0xf]  ;;  %v3149_v25 = vld [vmem:[#allocation11 + $0xd4] sm:$0xf0]  ;;  %v2716_v26 = vor.u32 %v3217_v16, %v2715_v13 }
  0xba   : > { %1871 = vmatpush.bf16.msra.mxu2 %v2936_v8  ;;  %1884 = vmatpush.bf16.msra.mxu3 %v3064_v9  ;;  %v3029_v31 = vld [vmem:[#allocation11 + $0x570] sm:$0xf0]  ;;  %v2904_v37 = vor.u32 %v3262_v27, %v2901_v29  ;;  %v3226_v39 = vld [vmem:[#allocation11 + $0x344] sm:$0xf]  ;;  %v2459_v9 = vld [vmem:[#allocation11 + $0xe8] sm:$0xf] }
  0xbb   : > { %v2629_v36 = vld [vmem:[#allocation11 + $0x250] sm:$0xf0]  ;;  %v3032_v38 = vor.u32 %v3294_v30, %v3029_v31  ;;  %v3258_v43 = vld [vmem:[#allocation11 + $0x444] sm:$0xf]  ;;  %v2460_v22 = vor.u32 %v3153_v10, %v2459_v9  ;;  %v2571_v29 = vld [vmem:[#allocation11 + $0x1c8] sm:$0xf] }
  0xbc   : > { %v2757_v20 = vld [vmem:[#allocation11 + $0x350] sm:$0xf0]  ;;  %v3290_v45 = vld [vmem:[#allocation11 + $0x544] sm:$0xf]  ;;  %v2632_v48 = vor.u32 %v3194_v35, %v2629_v36  ;;  %v3181_v30 = vld [vmem:[#allocation11 + $0x1d4] sm:$0xf0] }
  0xbd   : > { %1846 = vmatpush.bf16.msra.mxu0 %v2664_v18  ;;  %1859 = vmatpush.bf16.msra.mxu1 %v2792_v19  ;;  %v2885_v44 = vld [vmem:[#allocation11 + $0x450] sm:$0xf0]  ;;  %v2760_v49 = vor.u32 %v3226_v39, %v2757_v20  ;;  %v3190_v50 = vld [vmem:[#allocation11 + $0x224] sm:$0xf]  ;;  %v3249_v18 = vld [vmem:[#allocation11 + $0x3f4] sm:$0xf0] }
  0xbe   : > { %1872 = vmatpush.bf16.msra.mxu2 %v2920_v23  ;;  %1885 = vmatpush.bf16.msra.mxu3 %v3048_v24  ;;  %v3013_v47 = vld [vmem:[#allocation11 + $0x550] sm:$0xf0]  ;;  %v2888_v52 = vor.u32 %v3258_v43, %v2885_v44  ;;  %v3222_v54 = vld [vmem:[#allocation11 + $0x324] sm:$0xf]  ;;  %v2588_v23 = vor.u32 %v3185_v12, %v2587_v11  ;;  %v2443_v24 = vld [vmem:[#allocation11 + $0xc8] sm:$0xf]  ;;  %v2844_v27 = vor.u32 %v3249_v18, %v2843_v17 }
  0xbf   : > { %1799 = vmatmul.bf16.vlgmr.msrb.gmra.mxu0 %v3973_v28  ;;  %1825 = vmatmul.bf16.vlgmr.msrb.gmra.mxu2 %v3961_v40  ;;  %v2613_v51 = vld [vmem:[#allocation11 + $0x230] sm:$0xf0]  ;;  %v3016_v53 = vor.u32 %v3290_v45, %v3013_v47  ;;  %v3254_v56 = vld [vmem:[#allocation11 + $0x424] sm:$0xf]  ;;  %v2699_v31 = vld [vmem:[#allocation11 + $0x2c8] sm:$0xf]  ;;  %v2444_v36 = vor.u32 %v3149_v25, %v2443_v24 }
  0xc0   : > { %1812 = vmatmul.bf16.vlgmr.msrb.gmra.mxu1 %v3975_v32  ;;  %1838 = vmatmul.bf16.vlgmr.msrb.gmra.mxu3 %v3967_v46  ;;  %v2741_v55 = vld [vmem:[#allocation11 + $0x330] sm:$0xf0]  ;;  %v3286_v58 = vld [vmem:[#allocation11 + $0x524] sm:$0xf]  ;;  %v2616_v61 = vor.u32 %v3190_v50, %v2613_v51  ;;  %v3245_v35 = vld [vmem:[#allocation11 + $0x3d4] sm:$0xf0] }
  0xc1   : > { %1847 = vmatpush.bf16.msra.mxu0 %v2648_v33  ;;  %1860 = vmatpush.bf16.msra.mxu1 %v2776_v34  ;;  %v2869_v57 = vld [vmem:[#allocation11 + $0x430] sm:$0xf0]  ;;  %v3186_v60 = vld [vmem:[#allocation11 + $0x204] sm:$0xf]  ;;  %v2744_v62 = vor.u32 %v3222_v54, %v2741_v55  ;;  %v3213_v33 = vld [vmem:[#allocation11 + $0x2d4] sm:$0xf0] }
  0xc2   : > { %1873 = vmatpush.bf16.msra.mxu2 %v2904_v37  ;;  %1886 = vmatpush.bf16.msra.mxu3 %v3032_v38  ;;  %v2997_v59 = vld [vmem:[#allocation11 + $0x530] sm:$0xf0]  ;;  %v3218_v0 = vld [vmem:[#allocation11 + $0x304] sm:$0xf]  ;;  %v2872_v2 = vor.u32 %v3254_v56, %v2869_v57  ;;  %v2827_v34 = vld [vmem:[#allocation11 + $0x3c8] sm:$0xf]  ;;  %v2572_v37 = vor.u32 %v3181_v30, %v2571_v29  ;;  %v2700_v20 = vor.u32 %v3213_v33, %v2699_v31 }
  0xc3   : > { %v2597_v63 = vld [vmem:[#allocation11 + $0x210] sm:$0xf0]  ;;  %v3000_v3 = vor.u32 %v3286_v58, %v2997_v59  ;;  %v3250_v4 = vld [vmem:[#allocation11 + $0x404] sm:$0xf]  ;;  %v2427_v38 = vld [vmem:[#allocation11 + $0xa8] sm:$0xf]  ;;  %v2828_v43 = vor.u32 %v3245_v35, %v2827_v34 }
  0xc4   : > { %v2725_v1 = vld [vmem:[#allocation11 + $0x310] sm:$0xf0]  ;;  %v3282_v7 = vld [vmem:[#allocation11 + $0x504] sm:$0xf]  ;;  %v2600_v14 = vor.u32 %v3186_v60, %v2597_v63  ;;  %v3145_v39 = vld [vmem:[#allocation11 + $0xb4] sm:$0xf0] }
  0xc5   : > { %1848 = vmatpush.bf16.msra.mxu0 %v2632_v48  ;;  %1861 = vmatpush.bf16.msra.mxu1 %v2760_v49  ;;  %v2853_v6 = vld [vmem:[#allocation11 + $0x410] sm:$0xf0]  ;;  %v2728_v15 = vor.u32 %v3218_v0, %v2725_v1  ;;  %v2555_v44 = vld [vmem:[#allocation11 + $0x1a8] sm:$0xf]  ;;  %v3177_v45 = vld [vmem:[#allocation11 + $0x1b4] sm:$0xf0]  ;;  %v2428_v51 = vor.u32 %v3145_v39, %v2427_v38 }
  0xc6   : > { %1874 = vmatpush.bf16.msra.mxu2 %v2888_v52  ;;  %1887 = vmatpush.bf16.msra.mxu3 %v3016_v53  ;;  %v2981_v8 = vld [vmem:[#allocation11 + $0x510] sm:$0xf0]  ;;  %v2856_v19 = vor.u32 %v3250_v4, %v2853_v6  ;;  %v2683_v47 = vld [vmem:[#allocation11 + $0x2a8] sm:$0xf]  ;;  %v3209_v48 = vld [vmem:[#allocation11 + $0x2b4] sm:$0xf0]  ;;  %v2556_v52 = vor.u32 %v3177_v45, %v2555_v44 }
  0xc7   : > { %v2984_v21 = vor.u32 %v3282_v7, %v2981_v8  ;;  %v2811_v49 = vld [vmem:[#allocation11 + $0x3a8] sm:$0xf]  ;;  %v3241_v50 = vld [vmem:[#allocation11 + $0x3b4] sm:$0xf0]  ;;  %v2684_v55 = vor.u32 %v3209_v48, %v2683_v47  ;;  %s541_s24 = sand.u32 7, %s4029_s28  ;;  %s3121_s22 = sshll.u32 %s538_s27, 5 }
  0xc8   : > { %v2411_v53 = vld [vmem:[#allocation11 + $0x88] sm:$0xf]  ;;  %v3141_v54 = vld [vmem:[#allocation11 + $0x94] sm:$0xf0]  ;;  %v2812_v56 = vor.u32 %v3241_v50, %v2811_v49  ;;  %s433_s28 = scalar_lea.vmem %s3867_s8, %s4060_s29 [#allocation6]  ;;  %s4244_s10 = sshll.u32 %s3990_s21, 5 }
  0xc9   : > { %1849 = vmatpush.bf16.msra.mxu0 %v2616_v61  ;;  %1862 = vmatpush.bf16.msra.mxu1 %v2744_v62  ;;  %v2539_v57 = vld [vmem:[#allocation11 + $0x188] sm:$0xf]  ;;  %v3173_v58 = vld [vmem:[#allocation11 + $0x194] sm:$0xf0]  ;;  %v2412_v63 = vor.u32 %v3141_v54, %v2411_v53  ;;  %s4087_s2 = scalar_lea.vmem [#allocation12], %s4244_s10  ;;  %s3314_s27 = sshll.u32 %s3755_s14, 5 }
  0xca   : > { %1875 = vmatpush.bf16.msra.mxu2 %v2872_v2  ;;  %1888 = vmatpush.bf16.msra.mxu3 %v3000_v3  ;;  %v2667_v59 = vld [vmem:[#allocation11 + $0x288] sm:$0xf]  ;;  %v3205_v60 = vld [vmem:[#allocation11 + $0x294] sm:$0xf0]  ;;  %v2540_v0 = vor.u32 %v3173_v58, %v2539_v57  ;;  %v3151_v58 = vld [vmem:[#allocation11 + $0xec] sm:$0xf]  ;;  %s2076_s30 = scalar_lea.hbm %s4214_s6, %s3314_s27 }
  0xcb   : > { %v2795_v61 = vld [vmem:[#allocation11 + $0x388] sm:$0xf]  ;;  %v3237_v62 = vld [vmem:[#allocation11 + $0x394] sm:$0xf0]  ;;  %v2668_v3 = vor.u32 %v3205_v60, %v2667_v59  ;;  %s2078_s18 = sshll.u32 %s4087_s2, 4  ;;  %s2080_s4 = sshll.u32 %s2076_s30, 4  ;;  %s2079_s18 = int_to_ptr.vmem [resolvable:$true] %s2078_s18  ;;  %s2081_s4 = int_to_ptr.hbm [resolvable:$true] %s2080_s4 }
  0xcc   : > { %v2395_v1 = vld [vmem:[#allocation11 + $0x68] sm:$0xf]  ;;  %v3137_v2 = vld [vmem:[#allocation11 + $0x74] sm:$0xf0]  ;;  %v2796_v4 = vor.u32 %v3237_v62, %v2795_v61  ;;  %v2461_v61 = vld [vmem:[#allocation11 + $0xf8] sm:$0xf0] }
  0xcd   : > { %1850 = vmatpush.bf16.msra.mxu0 %v2600_v14  ;;  %1863 = vmatpush.bf16.msra.mxu1 %v2728_v15  ;;  %v2523_v6 = vld [vmem:[#allocation11 + $0x168] sm:$0xf]  ;;  %v3169_v7 = vld [vmem:[#allocation11 + $0x174] sm:$0xf0]  ;;  %v2396_v12 = vor.u32 %v3137_v2, %v2395_v1  ;;  %v3183_v62 = vld [vmem:[#allocation11 + $0x1ec] sm:$0xf] }
  0xce   : > { %1876 = vmatpush.bf16.msra.mxu2 %v2856_v19  ;;  %1889 = vmatpush.bf16.msra.mxu3 %v2984_v21  ;;  %v2651_v8 = vld [vmem:[#allocation11 + $0x268] sm:$0xf]  ;;  %v3201_v9 = vld [vmem:[#allocation11 + $0x274] sm:$0xf0]  ;;  %v2524_v13 = vor.u32 %v3169_v7, %v2523_v6  ;;  %v2464_v7 = vor.u32 %v3151_v58, %v2461_v61 }
  0xcf   : > { %v2779_v10 = vld [vmem:[#allocation11 + $0x368] sm:$0xf]  ;;  %v3233_v11 = vld [vmem:[#allocation11 + $0x374] sm:$0xf0]  ;;  %v2652_v16 = vor.u32 %v3201_v9, %v2651_v8 }
  0xd0   : > { %1851 = vmatmul.bf16.vlgmr.msra.gmra.mxu0 %v3963_v41  ;;  %1864 = vmatmul.bf16.vlgmr.msra.gmra.mxu1 %v3965_v42  ;;  %v2379_v14 = vld [vmem:[#allocation11 + $0x48] sm:$0xf]  ;;  %v3133_v15 = vld [vmem:[#allocation11 + $0x54] sm:$0xf0]  ;;  %v2780_v17 = vor.u32 %v3233_v11, %v2779_v10  ;;  %v3147_v11 = vld [vmem:[#allocation11 + $0xcc] sm:$0xf] }
  0xd1   : > { %1895 = vmatpush.bf16.msrb.mxu0 %v2460_v22  ;;  %1908 = vmatpush.bf16.msrb.mxu1 %v2588_v23  ;;  %v2507_v18 = vld [vmem:[#allocation11 + $0x148] sm:$0xf]  ;;  %v3165_v19 = vld [vmem:[#allocation11 + $0x154] sm:$0xf0]  ;;  %v2380_v25 = vor.u32 %v3133_v15, %v2379_v14  ;;  %v2573_v14 = vld [vmem:[#allocation11 + $0x1d8] sm:$0xf0] }
  0xd2   : > { %1921 = vmatpush.bf16.msrb.mxu2 %v2716_v26  ;;  %1934 = vmatpush.bf16.msrb.mxu3 %v2844_v27  ;;  %v2635_v21 = vld [vmem:[#allocation11 + $0x248] sm:$0xf]  ;;  %v3197_v22 = vld [vmem:[#allocation11 + $0x254] sm:$0xf0]  ;;  %v2508_v26 = vor.u32 %v3165_v19, %v2507_v18 }
  0xd3   : > { %1877 = vmatmul.bf16.vlgmr.msra.gmra.mxu2 %v3973_v28  ;;  %1890 = vmatmul.bf16.vlgmr.msra.gmra.mxu3 %v3975_v32  ;;  %v2763_v23 = vld [vmem:[#allocation11 + $0x348] sm:$0xf]  ;;  %v3229_v24 = vld [vmem:[#allocation11 + $0x354] sm:$0xf0]  ;;  %v2636_v30 = vor.u32 %v3197_v22, %v2635_v21 }
  0xd4   : > { %v2363_v27 = vld [vmem:[#allocation11 + $0x28] sm:$0xf]  ;;  %v3129_v29 = vld [vmem:[#allocation11 + $0x34] sm:$0xf0]  ;;  %v2764_v31 = vor.u32 %v3229_v24, %v2763_v23  ;;  %v3143_v24 = vld [vmem:[#allocation11 + $0xac] sm:$0xf] }
  0xd5   : > { %1896 = vmatpush.bf16.msrb.mxu0 %v2444_v36  ;;  %1909 = vmatpush.bf16.msrb.mxu1 %v2572_v37  ;;  %v2491_v33 = vld [vmem:[#allocation11 + $0x128] sm:$0xf]  ;;  %v3161_v34 = vld [vmem:[#allocation11 + $0x134] sm:$0xf0] }
  0xd6   : > { %1922 = vmatpush.bf16.msrb.mxu2 %v2700_v20  ;;  %1935 = vmatpush.bf16.msrb.mxu3 %v2828_v43  ;;  %v2619_v35 = vld [vmem:[#allocation11 + $0x228] sm:$0xf]  ;;  %v3193_v36 = vld [vmem:[#allocation11 + $0x234] sm:$0xf0]  ;;  %v2364_v20 = vor.u32 %v3129_v29, %v2363_v27  ;;  %v2492_v43 = vor.u32 %v3161_v34, %v2491_v33  ;;  %v2557_v27 = vld [vmem:[#allocation11 + $0x1b8] sm:$0xf0] }
  0xd7   : > { %v2747_v37 = vld [vmem:[#allocation11 + $0x328] sm:$0xf]  ;;  %v3225_v38 = vld [vmem:[#allocation11 + $0x334] sm:$0xf0]  ;;  %v2620_v48 = vor.u32 %v3193_v36, %v2619_v35 }
  0xd8   : > { %v2347_v39 = vld [vmem:[#allocation11 + $0x8] sm:$0xf]  ;;  %v3125_v44 = vld [vmem:[#allocation11 + $0x14] sm:$0xf0]  ;;  %v2748_v49 = vor.u32 %v3225_v38, %v2747_v37  ;;  %v3139_v38 = vld [vmem:[#allocation11 + $0x8c] sm:$0xf] }
  0xd9   : > { %1897 = vmatpush.bf16.msrb.mxu0 %v2428_v51  ;;  %1910 = vmatpush.bf16.msrb.mxu1 %v2556_v52  ;;  %v2475_v45 = vld [vmem:[#allocation11 + $0x108] sm:$0xf]  ;;  %v3157_v47 = vld [vmem:[#allocation11 + $0x114] sm:$0xf0]  ;;  %v2348_v59 = vor.u32 %v3125_v44, %v2347_v39  ;;  %v2413_v39 = vld [vmem:[#allocation11 + $0x98] sm:$0xf0] }
  0xda   : > { %1923 = vmatpush.bf16.msrb.mxu2 %v2684_v55  ;;  %1936 = vmatpush.bf16.msrb.mxu3 %v2812_v56  ;;  %v2603_v50 = vld [vmem:[#allocation11 + $0x208] sm:$0xf]  ;;  %v3189_v51 = vld [vmem:[#allocation11 + $0x214] sm:$0xf0]  ;;  %v2476_v60 = vor.u32 %v3157_v47, %v2475_v45 }
  0xdb   : > { %v2731_v52 = vld [vmem:[#allocation11 + $0x308] sm:$0xf]  ;;  %v3221_v53 = vld [vmem:[#allocation11 + $0x314] sm:$0xf0] }
  0xdc   : > { %v2971_v54 = vld [vmem:[#allocation11 + $0x4e8] sm:$0xf]  ;;  %v3281_v55 = vld [vmem:[#allocation11 + $0x4f4] sm:$0xf0]  ;;  %v2732_v1 = vor.u32 %v3221_v53, %v2731_v52  ;;  %v3135_v53 = vld [vmem:[#allocation11 + $0x6c] sm:$0xf] }
  0xdd   : > { %1898 = vmatpush.bf16.msrb.mxu0 %v2412_v63  ;;  %1911 = vmatpush.bf16.msrb.mxu1 %v2540_v0  ;;  %v3099_v56 = vld [vmem:[#allocation11 + $0x5e8] sm:$0xf]  ;;  %v3313_v57 = vld [vmem:[#allocation11 + $0x5f4] sm:$0xf0]  ;;  %v2589_v63 = vld [vmem:[#allocation11 + $0x1f8] sm:$0xf0]  ;;  %v2604_v0 = vor.u32 %v3189_v51, %v2603_v50  ;;  %v2972_v2 = vor.u32 %v3281_v55, %v2971_v54 }
  0xde   : > { %1924 = vmatpush.bf16.msrb.mxu2 %v2668_v3  ;;  %1937 = vmatpush.bf16.msrb.mxu3 %v2796_v4  ;;  %v3100_v3 = vor.u32 %v3313_v57, %v3099_v56  ;;  %v2955_v4 = vld [vmem:[#allocation11 + $0x4c8] sm:$0xf]  ;;  %v3277_v6 = vld [vmem:[#allocation11 + $0x4d4] sm:$0xf0]  ;;  %v2592_v8 = vor.u32 %v3183_v62, %v2589_v63  ;;  %v2397_v54 = vld [vmem:[#allocation11 + $0x78] sm:$0xf0] }
  0xdf   : > { %v3083_v9 = vld [vmem:[#allocation11 + $0x5c8] sm:$0xf]  ;;  %v3309_v10 = vld [vmem:[#allocation11 + $0x5d4] sm:$0xf0]  ;;  %v2956_v15 = vor.u32 %v3277_v6, %v2955_v4  ;;  %v3167_v55 = vld [vmem:[#allocation11 + $0x16c] sm:$0xf]  ;;  %v2400_v61 = vor.u32 %v3135_v53, %v2397_v54 }
  0xe0   : > { %v3273_v18 = vld [vmem:[#allocation11 + $0x4b4] sm:$0xf0]  ;;  %v3067_v22 = vld [vmem:[#allocation11 + $0x5a8] sm:$0xf]  ;;  %v2525_v56 = vld [vmem:[#allocation11 + $0x178] sm:$0xf0] }
  0xe1   : > { %1899 = vmatpush.bf16.msrb.mxu0 %v2396_v12  ;;  %1912 = vmatpush.bf16.msrb.mxu1 %v2524_v13  ;;  %v2445_v12 = vld [vmem:[#allocation11 + $0xd8] sm:$0xf0]  ;;  %v3179_v13 = vld [vmem:[#allocation11 + $0x1cc] sm:$0xf]  ;;  %v3305_v23 = vld [vmem:[#allocation11 + $0x5b4] sm:$0xf0]  ;;  %v2528_v62 = vor.u32 %v3167_v55, %v2525_v56 }
  0xe2   : > { %1925 = vmatpush.bf16.msrb.mxu2 %v2652_v16  ;;  %1938 = vmatpush.bf16.msrb.mxu3 %v2780_v17  ;;  %v3084_v16 = vor.u32 %v3309_v10, %v3083_v9  ;;  %v2939_v17 = vld [vmem:[#allocation11 + $0x4a8] sm:$0xf]  ;;  %v2448_v19 = vor.u32 %v3147_v11, %v2445_v12  ;;  %v2576_v21 = vor.u32 %v3179_v13, %v2573_v14  ;;  %v3269_v33 = vld [vmem:[#allocation11 + $0x494] sm:$0xf0]  ;;  %v2509_v4 = vld [vmem:[#allocation11 + $0x158] sm:$0xf0] }
  0xe3   : > { %v2940_v29 = vor.u32 %v3273_v18, %v2939_v17  ;;  %v3051_v36 = vld [vmem:[#allocation11 + $0x588] sm:$0xf]  ;;  %v3301_v37 = vld [vmem:[#allocation11 + $0x594] sm:$0xf0]  ;;  %v3127_v14 = vld [vmem:[#allocation11 + $0x2c] sm:$0xf] }
  0xe4   : > { %v2907_v44 = vld [vmem:[#allocation11 + $0x468] sm:$0xf]  ;;  %v3052_v47 = vor.u32 %v3301_v37, %v3051_v36  ;;  %v3297_v52 = vld [vmem:[#allocation11 + $0x574] sm:$0xf0]  ;;  %v2493_v17 = vld [vmem:[#allocation11 + $0x138] sm:$0xf0] }
  0xe5   : > { %1900 = vmatpush.bf16.msrb.mxu0 %v2380_v25  ;;  %1913 = vmatpush.bf16.msrb.mxu1 %v2508_v26  ;;  %v2429_v25 = vld [vmem:[#allocation11 + $0xb8] sm:$0xf0]  ;;  %v3175_v26 = vld [vmem:[#allocation11 + $0x1ac] sm:$0xf]  ;;  %v3035_v51 = vld [vmem:[#allocation11 + $0x568] sm:$0xf] }
  0xe6   : > { %1926 = vmatpush.bf16.msrb.mxu2 %v2636_v30  ;;  %1939 = vmatpush.bf16.msrb.mxu3 %v2764_v31  ;;  %v3068_v30 = vor.u32 %v3305_v23, %v3067_v22  ;;  %v2923_v31 = vld [vmem:[#allocation11 + $0x488] sm:$0xf]  ;;  %v2432_v34 = vor.u32 %v3143_v24, %v2429_v25  ;;  %v2560_v35 = vor.u32 %v3175_v26, %v2557_v27  ;;  %v3257_v9 = vld [vmem:[#allocation11 + $0x434] sm:$0xf0]  ;;  %v3123_v27 = vld [vmem:[#allocation11 + $0xc] sm:$0xf] }
  0xe7   : > { %v2924_v45 = vor.u32 %v3269_v33, %v2923_v31  ;;  %v3036_v58 = vor.u32 %v3297_v52, %v3035_v51  ;;  %v3019_v63 = vld [vmem:[#allocation11 + $0x548] sm:$0xf]  ;;  %v3289_v13 = vld [vmem:[#allocation11 + $0x534] sm:$0xf0]  ;;  %v2477_v31 = vld [vmem:[#allocation11 + $0x118] sm:$0xf0] }
  0xe8   : > { %v2875_v6 = vld [vmem:[#allocation11 + $0x428] sm:$0xf]  ;;  %v3285_v24 = vld [vmem:[#allocation11 + $0x514] sm:$0xf0]  ;;  %v3215_v33 = vld [vmem:[#allocation11 + $0x2ec] sm:$0xf] }
  0xe9   : > { %1901 = vmatpush.bf16.msrb.mxu0 %v2364_v20  ;;  %1914 = vmatpush.bf16.msrb.mxu1 %v2492_v43  ;;  %v3171_v20 = vld [vmem:[#allocation11 + $0x18c] sm:$0xf]  ;;  %v2541_v43 = vld [vmem:[#allocation11 + $0x198] sm:$0xf0]  ;;  %v3003_v12 = vld [vmem:[#allocation11 + $0x528] sm:$0xf] }
  0xea   : > { %1927 = vmatpush.bf16.msrb.mxu2 %v2620_v48  ;;  %1940 = vmatpush.bf16.msrb.mxu3 %v2748_v49  ;;  %v3265_v48 = vld [vmem:[#allocation11 + $0x474] sm:$0xf0]  ;;  %v2416_v49 = vor.u32 %v3139_v38, %v2413_v39  ;;  %v2544_v50 = vor.u32 %v3171_v20, %v2541_v43  ;;  %v2859_v18 = vld [vmem:[#allocation11 + $0x408] sm:$0xf]  ;;  %v3004_v22 = vor.u32 %v3289_v13, %v3003_v12  ;;  %v2845_v36 = vld [vmem:[#allocation11 + $0x3f8] sm:$0xf0] }
  0xeb   : > { %v2908_v57 = vor.u32 %v3265_v48, %v2907_v44  ;;  %v2987_v23 = vld [vmem:[#allocation11 + $0x508] sm:$0xf]  ;;  %v3279_v37 = vld [vmem:[#allocation11 + $0x4ec] sm:$0xf]  ;;  %v2973_v20 = vld [vmem:[#allocation11 + $0x4f8] sm:$0xf0] }
  0xec   : > { %v2988_v39 = vor.u32 %v3285_v24, %v2987_v23  ;;  %v3311_v43 = vld [vmem:[#allocation11 + $0x5ec] sm:$0xf]  ;;  %v3101_v44 = vld [vmem:[#allocation11 + $0x5f8] sm:$0xf0]  ;;  %v2976_v52 = vor.u32 %v3279_v37, %v2973_v20 }
  0xed   : > { %1902 = vmatpush.bf16.msrb.mxu0 %v2348_v59  ;;  %1915 = vmatpush.bf16.msrb.mxu1 %v2476_v60  ;;  %v2891_v59 = vld [vmem:[#allocation11 + $0x448] sm:$0xf]  ;;  %v3261_v60 = vld [vmem:[#allocation11 + $0x454] sm:$0xf0]  ;;  %v2701_v51 = vld [vmem:[#allocation11 + $0x2d8] sm:$0xf0]  ;;  %v3104_v53 = vor.u32 %v3311_v43, %v3101_v44 }
  0xee   : > { %1928 = vmatpush.bf16.msrb.mxu2 %v2604_v0  ;;  %1941 = vmatpush.bf16.msrb.mxu3 %v2732_v1  ;;  %v3293_v0 = vld [vmem:[#allocation11 + $0x554] sm:$0xf0]  ;;  %v3131_v1 = vld [vmem:[#allocation11 + $0x4c] sm:$0xf]  ;;  %v2829_v55 = vld [vmem:[#allocation11 + $0x3d8] sm:$0xf0] }
  0xef   : > { %v3243_v54 = vld [vmem:[#allocation11 + $0x3cc] sm:$0xf]  ;;  %v2653_v23 = vld [vmem:[#allocation11 + $0x278] sm:$0xf0] }
  0xf0   : > { %1903 = vmatmul.bf16.vlgmr.msrb.gmra.mxu0 %v3961_v40  ;;  %1916 = vmatmul.bf16.vlgmr.msrb.gmra.mxu1 %v3967_v46  ;;  %v3275_v56 = vld [vmem:[#allocation11 + $0x4cc] sm:$0xf]  ;;  %v378_v5 = vld [vmem:[%s377_s13] ss:$8 sm:$0xf]  ;;  %s517_s13 = scalar_lea.vmem %s3867_s8, %s4083_s25 [#allocation6]  ;;  %s3552_s25 = scalar_lea.hbm %s4214_s6, 64 }
  0xf1   : > { %1947 = vmatpush.bf16.msra.mxu0 %v2972_v2  ;;  %1960 = vmatpush.bf16.msra.mxu1 %v3100_v3  ;;  %v2381_v2 = vld [vmem:[#allocation11 + $0x58] sm:$0xf0]  ;;  %v3163_v3 = vld [vmem:[#allocation11 + $0x14c] sm:$0xf] }
  0xf2   : > { %1973 = vmatpush.bf16.msra.mxu2 %v2464_v7  ;;  %1986 = vmatpush.bf16.msra.mxu3 %v2592_v8  ;;  %v2892_v7 = vor.u32 %v3261_v60, %v2891_v59  ;;  %v3020_v8 = vor.u32 %v3293_v0, %v3019_v63  ;;  %v2384_v10 = vor.u32 %v3131_v1, %v2381_v2  ;;  %v3085_v59 = vld [vmem:[#allocation11 + $0x5d8] sm:$0xf0]  ;;  %v3239_v2 = vld [vmem:[#allocation11 + $0x3ac] sm:$0xf] }
  0xf3   : > { %1929 = vmatmul.bf16.vlgmr.msrb.gmra.mxu2 %v3963_v41  ;;  %1942 = vmatmul.bf16.vlgmr.msrb.gmra.mxu3 %v3965_v42  ;;  %v2512_v11 = vor.u32 %v3163_v3, %v2509_v4  ;;  %v2685_v63 = vld [vmem:[#allocation11 + $0x2b8] sm:$0xf0]  ;;  %v3271_v4 = vld [vmem:[#allocation11 + $0x4ac] sm:$0xf] }
  0xf4   : > { %v2813_v3 = vld [vmem:[#allocation11 + $0x3b8] sm:$0xf0]  ;;  %v3235_v12 = vld [vmem:[#allocation11 + $0x38c] sm:$0xf] }
  0xf5   : > { %1948 = vmatpush.bf16.msra.mxu0 %v2956_v15  ;;  %1961 = vmatpush.bf16.msra.mxu1 %v3084_v16  ;;  %v2365_v15 = vld [vmem:[#allocation11 + $0x38] sm:$0xf0]  ;;  %v3159_v16 = vld [vmem:[#allocation11 + $0x12c] sm:$0xf] }
  0xf6   : > { %1974 = vmatpush.bf16.msra.mxu2 %v2448_v19  ;;  %1987 = vmatpush.bf16.msra.mxu3 %v2576_v21  ;;  %v3253_v19 = vld [vmem:[#allocation11 + $0x414] sm:$0xf0]  ;;  %v2876_v21 = vor.u32 %v3257_v9, %v2875_v6  ;;  %v2368_v25 = vor.u32 %v3127_v14, %v2365_v15  ;;  %v2496_v26 = vor.u32 %v3159_v16, %v2493_v17  ;;  %v2941_v6 = vld [vmem:[#allocation11 + $0x4b8] sm:$0xf0]  ;;  %v3203_v9 = vld [vmem:[#allocation11 + $0x28c] sm:$0xf] }
  0xf7   : > { %v2860_v38 = vor.u32 %v3253_v19, %v2859_v18  ;;  %v2797_v14 = vld [vmem:[#allocation11 + $0x398] sm:$0xf0]  ;;  %v3267_v15 = vld [vmem:[#allocation11 + $0x48c] sm:$0xf] }
  0xf8   : > { %v2925_v16 = vld [vmem:[#allocation11 + $0x498] sm:$0xf0]  ;;  %v3299_v17 = vld [vmem:[#allocation11 + $0x58c] sm:$0xf] }
  0xf9   : > { %1949 = vmatpush.bf16.msra.mxu0 %v2940_v29  ;;  %1962 = vmatpush.bf16.msra.mxu1 %v3068_v30  ;;  %v2349_v29 = vld [vmem:[#allocation11 + $0x18] sm:$0xf0]  ;;  %v3155_v30 = vld [vmem:[#allocation11 + $0x10c] sm:$0xf] }
  0xfa   : > { %1975 = vmatpush.bf16.msra.mxu2 %v2432_v34  ;;  %1988 = vmatpush.bf16.msra.mxu3 %v2560_v35  ;;  %v2717_v34 = vld [vmem:[#allocation11 + $0x2f8] sm:$0xf0]  ;;  %v3247_v35 = vld [vmem:[#allocation11 + $0x3ec] sm:$0xf] }
  0xfb   : > { %v2720_v48 = vor.u32 %v3215_v33, %v2717_v34  ;;  %v3053_v18 = vld [vmem:[#allocation11 + $0x598] sm:$0xf0]  ;;  %v3231_v24 = vld [vmem:[#allocation11 + $0x36c] sm:$0xf] }
  0xfc   : > { %v3037_v33 = vld [vmem:[#allocation11 + $0x578] sm:$0xf0]  ;;  %v3195_v34 = vld [vmem:[#allocation11 + $0x24c] sm:$0xf] }
  0xfd   : > { %1950 = vmatpush.bf16.msra.mxu0 %v2924_v45  ;;  %1963 = vmatpush.bf16.msra.mxu1 %v3052_v47  ;;  %v2352_v45 = vor.u32 %v3123_v27, %v2349_v29  ;;  %v2480_v47 = vor.u32 %v3155_v30, %v2477_v31  ;;  %v2781_v27 = vld [vmem:[#allocation11 + $0x378] sm:$0xf0]  ;;  %v3263_v29 = vld [vmem:[#allocation11 + $0x46c] sm:$0xf] }
  0xfe   : > { %1976 = vmatpush.bf16.msra.mxu2 %v2416_v49  ;;  %1989 = vmatpush.bf16.msra.mxu3 %v2544_v50  ;;  %v2848_v49 = vor.u32 %v3247_v35, %v2845_v36  ;;  %v3211_v50 = vld [vmem:[#allocation11 + $0x2cc] sm:$0xf]  ;;  %v2909_v30 = vld [vmem:[#allocation11 + $0x478] sm:$0xf0]  ;;  %v2784_v37 = vor.u32 %v3231_v24, %v2781_v27 }
  0xff   : > { %v2704_v60 = vor.u32 %v3211_v50, %v2701_v51  ;;  %v3295_v31 = vld [vmem:[#allocation11 + $0x56c] sm:$0xf]  ;;  %v2637_v35 = vld [vmem:[#allocation11 + $0x258] sm:$0xf0]  ;;  %v2912_v20 = vor.u32 %v3263_v29, %v2909_v30 }
 0x100   : > { %v3040_v43 = vor.u32 %v3295_v31, %v3037_v33  ;;  %v3259_v44 = vld [vmem:[#allocation11 + $0x44c] sm:$0xf]  ;;  %v2621_v50 = vld [vmem:[#allocation11 + $0x238] sm:$0xf0]  ;;  %v2640_v51 = vor.u32 %v3195_v34, %v2637_v35 }
 0x101   : > { %1951 = vmatpush.bf16.msra.mxu0 %v2908_v57  ;;  %1964 = vmatpush.bf16.msra.mxu1 %v3036_v58  ;;  %v2957_v57 = vld [vmem:[#allocation11 + $0x4d8] sm:$0xf0]  ;;  %v3307_v58 = vld [vmem:[#allocation11 + $0x5cc] sm:$0xf] }
 0x102   : > { %1977 = vmatpush.bf16.msra.mxu2 %v2400_v61  ;;  %1990 = vmatpush.bf16.msra.mxu3 %v2528_v62  ;;  %v2832_v61 = vor.u32 %v3243_v54, %v2829_v55  ;;  %v3207_v62 = vld [vmem:[#allocation11 + $0x2ac] sm:$0xf]  ;;  %v2960_v0 = vor.u32 %v3275_v56, %v2957_v57  ;;  %v3088_v1 = vor.u32 %v3307_v58, %v3085_v59  ;;  %v2749_v54 = vld [vmem:[#allocation11 + $0x338] sm:$0xf0] }
 0x103   : > { %v3255_v57 = vld [vmem:[#allocation11 + $0x42c] sm:$0xf]  ;;  %v2877_v58 = vld [vmem:[#allocation11 + $0x438] sm:$0xf0] }
 0x104   : > { %v3287_v59 = vld [vmem:[#allocation11 + $0x52c] sm:$0xf]  ;;  %2298 = vst.msk [vmem:[%s4087_s2 + $0x1] ss:$8 sm:$0xf] %vm4077_vm1, %v378_v5 }
 0x105   : > { %1952 = vmatpush.bf16.msra.mxu0 %v2892_v7  ;;  %1965 = vmatpush.bf16.msra.mxu1 %v3020_v8  ;;  %v3303_v7 = vld [vmem:[#allocation11 + $0x5ac] sm:$0xf]  ;;  %v3069_v8 = vld [vmem:[#allocation11 + $0x5b8] sm:$0xf0] }
 0x106   : > { %1978 = vmatpush.bf16.msra.mxu2 %v2384_v10  ;;  %1991 = vmatpush.bf16.msra.mxu3 %v2512_v11  ;;  %v2688_v10 = vor.u32 %v3207_v62, %v2685_v63  ;;  %v2816_v11 = vor.u32 %v3239_v2, %v2813_v3  ;;  %v3072_v13 = vor.u32 %v3303_v7, %v3069_v8  ;;  %v3187_v63 = vld [vmem:[#allocation11 + $0x20c] sm:$0xf]  ;;  %v2733_v2 = vld [vmem:[#allocation11 + $0x318] sm:$0xf0] }
 0x107   : > { %v2861_v7 = vld [vmem:[#allocation11 + $0x418] sm:$0xf0]  ;;  %v3283_v8 = vld [vmem:[#allocation11 + $0x50c] sm:$0xf] }
 0x109   : > { %1953 = vmatpush.bf16.msra.mxu0 %v2876_v21  ;;  %1966 = vmatpush.bf16.msra.mxu1 %v3004_v22  ;;  %v2800_v21 = vor.u32 %v3235_v12, %v2797_v14  ;;  %v3199_v22 = vld [vmem:[#allocation11 + $0x26c] sm:$0xf]  ;;  %v434_v12 = vld [vmem:[%s433_s28] ss:$8 sm:$0xf] }
 0x10a   : > { %1979 = vmatpush.bf16.msra.mxu2 %v2368_v25  ;;  %1992 = vmatpush.bf16.msra.mxu3 %v2496_v26  ;;  %v2928_v25 = vor.u32 %v3267_v15, %v2925_v16  ;;  %v3056_v26 = vor.u32 %v3299_v17, %v3053_v18  ;;  %v2656_v36 = vor.u32 %v3199_v22, %v2653_v23  ;;  %v518_v16 = vld [vmem:[%s517_s13] ss:$8 sm:$0xf] }
 0x10b   : > { %2310 = vst.msk [vmem:[%s4087_s2 + $0x3] ss:$8 sm:$0xf] %vm4077_vm1, %v434_v12 }
 0x10c   : > { %2328 = vst.msk [vmem:[%s4087_s2 + $0x6] ss:$8 sm:$0xf] %vm4077_vm1, %v518_v16 }
 0x10d   : > { %1954 = vmatpush.bf16.msra.mxu0 %v2860_v38  ;;  %1967 = vmatpush.bf16.msra.mxu1 %v2988_v39  ;;  %v3227_v38 = vld [vmem:[#allocation11 + $0x34c] sm:$0xf]  ;;  %v2765_v39 = vld [vmem:[#allocation11 + $0x358] sm:$0xf0] }
 0x10e   : > { %1980 = vmatpush.bf16.msra.mxu2 %v2352_v45  ;;  %1993 = vmatpush.bf16.msra.mxu3 %v2480_v47  ;;  %v2893_v45 = vld [vmem:[#allocation11 + $0x458] sm:$0xf0]  ;;  %v3291_v47 = vld [vmem:[#allocation11 + $0x54c] sm:$0xf] }
 0x10f   : > { %v2896_v55 = vor.u32 %v3259_v44, %v2893_v45 }
 0x110   : > { %1955 = vmatmul.bf16.vlgmr.msra.gmra.mxu0 %v3973_v28  ;;  %1968 = vmatmul.bf16.vlgmr.msra.gmra.mxu1 %v3975_v32 }
 0x111   : > { %1999 = vmatpush.bf16.msrb.mxu0 %v2720_v48  ;;  %2012 = vmatpush.bf16.msrb.mxu1 %v2848_v49  ;;  %v3021_v48 = vld [vmem:[#allocation11 + $0x558] sm:$0xf0]  ;;  %v3191_v49 = vld [vmem:[#allocation11 + $0x22c] sm:$0xf] }
 0x112   : > { %2025 = vmatpush.bf16.msrb.mxu2 %v2976_v52  ;;  %2038 = vmatpush.bf16.msrb.mxu3 %v3104_v53  ;;  %v2768_v52 = vor.u32 %v3227_v38, %v2765_v39  ;;  %v3223_v53 = vld [vmem:[#allocation11 + $0x32c] sm:$0xf]  ;;  %v3024_v56 = vor.u32 %v3291_v47, %v3021_v48  ;;  %v2624_v3 = vor.u32 %v3191_v49, %v2621_v50 }
 0x113   : > { %1981 = vmatmul.bf16.vlgmr.msra.gmra.mxu2 %v3961_v40  ;;  %1994 = vmatmul.bf16.vlgmr.msra.gmra.mxu3 %v3967_v46  ;;  %v2669_v40 = vld [vmem:[#allocation11 + $0x298] sm:$0xf0]  ;;  %v2944_v46 = vor.u32 %v3271_v4, %v2941_v6  ;;  %v2752_v4 = vor.u32 %v3223_v53, %v2749_v54  ;;  %v3251_v6 = vld [vmem:[#allocation11 + $0x40c] sm:$0xf] }
 0x114   : > { %v2672_v19 = vor.u32 %v3203_v9, %v2669_v40  ;;  %v2989_v9 = vld [vmem:[#allocation11 + $0x518] sm:$0xf0]  ;;  %v2864_v17 = vor.u32 %v3251_v6, %v2861_v7 }
 0x115   : > { %2000 = vmatpush.bf16.msrb.mxu0 %v2704_v60  ;;  %2013 = vmatpush.bf16.msrb.mxu1 %v2832_v61  ;;  %v3005_v60 = vld [vmem:[#allocation11 + $0x538] sm:$0xf0]  ;;  %v346_v61 = vld [vmem:[%s345_s20] ss:$8 sm:$0xf]  ;;  %s4097_s20 = sadd.s32 %s3121_s22, %s541_s24  ;;  %v2992_v18 = vor.u32 %v3283_v8, %v2989_v9  ;;  %s2060_s24 = scalar_lea.sflag [#allocation8], %s3990_s21 }
 0x116   : > { %2026 = vmatpush.bf16.msrb.mxu2 %v2960_v0  ;;  %2039 = vmatpush.bf16.msrb.mxu3 %v3088_v1  ;;  %v2605_v0 = vld [vmem:[#allocation11 + $0x218] sm:$0xf0]  ;;  %v3219_v1 = vld [vmem:[#allocation11 + $0x30c] sm:$0xf]  ;;  %v3008_v40 = vor.u32 %v3287_v59, %v3005_v60  ;;  %s545_s29 = scalar_lea.vmem %s3867_s8, %s4097_s20 [#allocation6]  ;;  %s3546_s22 = sshra.s32 %s2081_s4, 4  ;;  %s3547_s22 = int_to_ptr.hbm [resolvable:$true] %s3546_s22 }
 0x117   : > { %351 = vst.msk [vmem:[%s4087_s2] ss:$8 sm:$0xf] %vm4077_vm1, %v346_v61  ;;  %v2608_v14 = vor.u32 %v3187_v63, %v2605_v0  ;;  %v2736_v15 = vor.u32 %v3219_v1, %v2733_v2  ;;  %p3553_p12 = scmp.lt.s32.totalorder %s3547_s22, %s4214_s6 }
 0x119   : > { %2001 = vmatpush.bf16.msrb.mxu0 %v2688_v10  ;;  %2014 = vmatpush.bf16.msrb.mxu1 %v2816_v11  ;;  %v406_v10 = vld [vmem:[%s405_s23] ss:$8 sm:$0xf]  ;;  %v2880_v11 = vor.u32 %v3255_v57, %v2877_v58  ;;  %s3548_s23 = scalar_lea.hbm %s3547_s22, 32 }
 0x11a   : > { %2027 = vmatpush.bf16.msrb.mxu2 %v2944_v46  ;;  %2040 = vmatpush.bf16.msrb.mxu3 %v3072_v13  ;;  %2304 = vst.msk [vmem:[%s4087_s2 + $0x2] ss:$8 sm:$0xf] %vm4077_vm1, %v406_v10  ;;  %v462_v46 = vld [vmem:[%s461_s9] ss:$8 sm:$0xf]  ;;  %p3549_p1 = scmp.ne.s32.totalorder %s3547_s22, %s3548_s23  ;;  %p3554_p2 = scmp.lt.s32.totalorder %s3552_s25, %s3548_s23 }
 0x11b   : > { %2316 = vst.msk [vmem:[%s4087_s2 + $0x4] ss:$8 sm:$0xf] %vm4077_vm1, %v462_v46  ;;  %v490_v13 = vld [vmem:[%s489_s15] ss:$8 sm:$0xf] }
 0x11c   : > { %2322 = vst.msk [vmem:[%s4087_s2 + $0x5] ss:$8 sm:$0xf] %vm4077_vm1, %v490_v13  ;;  %p3550_p4 = pnand %p3549_p1, %p3771_p6  ;;  %p3555_p0 = por %p3554_p2, %p3553_p12 }
 0x11d   : > { %2002 = vmatpush.bf16.msrb.mxu0 %v2672_v19  ;;  %2015 = vmatpush.bf16.msrb.mxu1 %v2800_v21  ;;  %v546_v19 = vld [vmem:[%s545_s29] ss:$8 sm:$0xf] }
 0x11e   : > { %2028 = vmatpush.bf16.msrb.mxu2 %v2928_v25  ;;  %2041 = vmatpush.bf16.msrb.mxu3 %v3056_v26  ;;  %2334 = vst.msk [vmem:[%s4087_s2 + $0x7] ss:$8 sm:$0xf] %vm4077_vm1, %v546_v19  ;;  %v4129_v21 = vld [vmem:[%s4213_s5] sm:$0xf]  ;;  %p3551_p11 = pneg %p3550_p4 }
 0x11f   : > { %v771_v22 = vperm.slane %v4129_v21, 0 }
 0x120   : > { %p3556_p13 = pnand %p3555_p0, %p3551_p11 }
 0x121   : > { %2003 = vmatpush.bf16.msrb.mxu0 %v2656_v36  ;;  %2016 = vmatpush.bf16.msrb.mxu1 %v2784_v37 }
 0x122   : > { %2029 = vmatpush.bf16.msrb.mxu2 %v2912_v20  ;;  %2042 = vmatpush.bf16.msrb.mxu3 %v3040_v43 }
 0x125   : > { %2004 = vmatpush.bf16.msrb.mxu0 %v2640_v51  ;;  %2017 = vmatpush.bf16.msrb.mxu1 %v2768_v52 }
 0x126   : > { %2030 = vmatpush.bf16.msrb.mxu2 %v2896_v55  ;;  %2043 = vmatpush.bf16.msrb.mxu3 %v3024_v56 }
 0x129   : > { %2005 = vmatpush.bf16.msrb.mxu0 %v2624_v3  ;;  %2018 = vmatpush.bf16.msrb.mxu1 %v2752_v4 }
 0x12a   : > { %2031 = vmatpush.bf16.msrb.mxu2 %v2880_v11  ;;  %2044 = vmatpush.bf16.msrb.mxu3 %v3008_v40 }
 0x12c   : > { %v1748_v23 = vpop.f32.mrf.mxu0 }
 0x12d   : > { %2006 = vmatpush.bf16.msrb.mxu0 %v2608_v14  ;;  %2019 = vmatpush.bf16.msrb.mxu1 %v2736_v15  ;;  %v1749_v24 = vadd.f32 %v1748_v23, %v771_v22  ;;  %v1761_v25 = vpop.f32.mrf.mxu1 }
 0x12e   : > { %2032 = vmatpush.bf16.msrb.mxu2 %v2864_v17  ;;  %2045 = vmatpush.bf16.msrb.mxu3 %v2992_v18 }
 0x12f   : > { %v1762_v26 = vadd.f32 %v1761_v25, %v1749_v24 }
 0x130   : > { %2007 = vmatmul.bf16.vlgmr.msrb.gmra.mxu0 %v3963_v41  ;;  %2020 = vmatmul.bf16.vlgmr.msrb.gmra.mxu1 %v3965_v42 }
 0x131   : > { %2033 = vmatmul.bf16.vlgmr.msrb.gmra.mxu2 %v3973_v28  ;;  %2046 = vmatmul.bf16.vlgmr.msrb.gmra.mxu3 %v3975_v32 }
 0x132   : > { %v1774_v27 = vpop.f32.mrf.mxu2 }
 0x133   : > { %v1787_v29 = vpop.f32.mrf.mxu3  ;;  %v1775_v31 = vadd.f32 %v1774_v27, %v1762_v26 }
 0x134   : > { %v1750_v30 = vpop.f32.mrf.mxu0 }
 0x135   : > { %v1763_v33 = vpop.f32.mrf.mxu1  ;;  %v1788_v41 = vadd.f32 %v1787_v29, %v1775_v31 }
 0x136   : > { %3559 = shalt.err (!%p3556_p13)
}
 0x137   : > { %3327 = dma.vmem_to_hbm [thread:$0]  (%p3771_p6), %s2079_s18, 512, %s2081_s4, %s2060_s24   ;;  %v772_v39 = vperm.slane %v4129_v21, 1  ;;  %v773_v4 = vperm.slane %v4129_v21, 2  ;;  %v774_v23 = vperm.slane %v4129_v21, 3 }
 0x138   : > { %s4245_s9 = sshll.u32 %s3990_s21, 5  ;;  %s2091_s29 = scalar_lea.hbm %s4215_s7, %s3314_s27 }
 0x139   : > { %s4156_s20 = scalar_lea.vmem [#allocation13], %s4245_s9  ;;  %s2095_s19 = sshll.u32 %s2091_s29, 4  ;;  %s2096_s19 = int_to_ptr.hbm [resolvable:$true] %s2095_s19 }
 0x13a   : > { %v1776_v42 = vpop.f32.mrf.mxu2  ;;  %s2093_s8 = sshll.u32 %s4156_s20, 4  ;;  %s2065_s14 = scalar_lea.sflag [#allocation14], %s3990_s21  ;;  %s2094_s8 = int_to_ptr.vmem [resolvable:$true] %s2093_s8 }
 0x13b   : > { %v1789_v28 = vpop.f32.mrf.mxu3  ;;  %s3574_s18 = sshra.s32 %s2096_s19, 4  ;;  %s3580_s30 = scalar_lea.hbm %s4215_s7, 64  ;;  %s3575_s18 = int_to_ptr.hbm [resolvable:$true] %s3574_s18 }
 0x13c   : > { %v1800_v32 = vpop.f32.mrf.mxu0  ;;  %s3576_s16 = scalar_lea.hbm %s3575_s18, 32  ;;  %p3581_p8 = scmp.lt.s32.totalorder %s3575_s18, %s4215_s7 }
 0x13d   : > { %v1801_v34 = vadd.f32 %v1800_v32, %v1788_v41  ;;  %v1813_v35 = vpop.f32.mrf.mxu1  ;;  %p3577_p3 = scmp.ne.s32.totalorder %s3575_s18, %s3576_s16  ;;  %p3582_p9 = scmp.lt.s32.totalorder %s3580_s30, %s3576_s16 }
 0x13f   : > { %v1814_v36 = vadd.f32 %v1813_v35, %v1801_v34  ;;  %p3578_p5 = pnand %p3577_p3, %p3771_p6  ;;  %p3583_p1 = por %p3582_p9, %p3581_p8 }
 0x141   : > { %v2051_v37 = vmax.f32 %v1814_v36, 0.0  ;;  %p3579_p7 = pneg %p3578_p5 }
 0x142   : > { %v1826_v38 = vpop.f32.mrf.mxu2 }
 0x143   : > { %2055 = vst [vmem:[%s4156_s20] sm:$0xff] %v2051_v37  ;;  %v1839_v20 = vpop.f32.mrf.mxu3  ;;  %v1827_v45 = vadd.f32 %v1826_v38, %v772_v39  ;;  %p3584_p4 = pnand %p3583_p1, %p3579_p7 }
 0x144   : > { %v1802_v43 = vpop.f32.mrf.mxu0 }
 0x145   : > { %v1815_v44 = vpop.f32.mrf.mxu1  ;;  %v1840_v48 = vadd.f32 %v1839_v20, %v1827_v45 }
 0x14a   : > { %v1828_v47 = vpop.f32.mrf.mxu2 }
 0x14b   : > { %v1841_v49 = vpop.f32.mrf.mxu3 }
 0x14d   : > { %v1852_v50 = vpop.f32.mrf.mxu0  ;;  %v1865_v52 = vpop.f32.mrf.mxu1 }
 0x14e   : > { %v1853_v51 = vadd.f32 %v1852_v50, %v1840_v48 }
 0x150   : > { %v1866_v53 = vadd.f32 %v1865_v52, %v1853_v51 }
 0x155   : > { %v1854_v57 = vpop.f32.mrf.mxu0  ;;  %v1867_v59 = vpop.f32.mrf.mxu1 }
 0x156   : > { %v1878_v54 = vpop.f32.mrf.mxu2  ;;  %v1891_v56 = vpop.f32.mrf.mxu3 }
 0x157   : > { %v1879_v55 = vadd.f32 %v1878_v54, %v1866_v53 }
 0x159   : > { %v1892_v58 = vadd.f32 %v1891_v56, %v1879_v55 }
 0x15b   : > { %v2052_v60 = vmax.f32 %v1892_v58, 0.0 }
 0x15d   : > { %2056 = vst [vmem:[%s4156_s20 + $0x8] sm:$0xff] %v2052_v60 }
 0x15e   : > { %v1880_v61 = vpop.f32.mrf.mxu2  ;;  %v1893_v62 = vpop.f32.mrf.mxu3 }
 0x16d   : > { %v1904_v63 = vpop.f32.mrf.mxu0  ;;  %v1917_v0 = vpop.f32.mrf.mxu1 }
 0x16e   : > { %v1905_v7 = vadd.f32 %v1904_v63, %v773_v4 }
 0x170   : > { %v1918_v9 = vadd.f32 %v1917_v0, %v1905_v7 }
 0x175   : > { %v1906_v5 = vpop.f32.mrf.mxu0  ;;  %v1919_v3 = vpop.f32.mrf.mxu1 }
 0x176   : > { %v1930_v1 = vpop.f32.mrf.mxu2  ;;  %v1943_v2 = vpop.f32.mrf.mxu3 }
 0x177   : > { %v1931_v10 = vadd.f32 %v1930_v1, %v1918_v9 }
 0x179   : > { %v1944_v11 = vadd.f32 %v1943_v2, %v1931_v10 }
 0x17e   : > { %v1932_v6 = vpop.f32.mrf.mxu2  ;;  %v1945_v8 = vpop.f32.mrf.mxu3 }
 0x18d   : > { %v1956_v40 = vpop.f32.mrf.mxu0  ;;  %v1969_v46 = vpop.f32.mrf.mxu1 }
 0x18e   : > { %v1957_v12 = vadd.f32 %v1956_v40, %v1944_v11 }
 0x190   : > { %v1970_v13 = vadd.f32 %v1969_v46, %v1957_v12 }
 0x192   : > { %v2053_v14 = vmax.f32 %v1970_v13, 0.0 }
 0x194   : > { %2057 = vst [vmem:[%s4156_s20 + $0x10] sm:$0xff] %v2053_v14 }
 0x195   : > { %v1958_v17 = vpop.f32.mrf.mxu0  ;;  %v1971_v18 = vpop.f32.mrf.mxu1 }
 0x196   : > { %v1982_v15 = vpop.f32.mrf.mxu2  ;;  %v1995_v16 = vpop.f32.mrf.mxu3 }
 0x197   : > { %v1983_v24 = vadd.f32 %v1982_v15, %v774_v23 }
 0x199   : > { %v1996_v25 = vadd.f32 %v1995_v16, %v1983_v24 }
 0x19e   : > { %v1984_v19 = vpop.f32.mrf.mxu2  ;;  %v1997_v22 = vpop.f32.mrf.mxu3 }
 0x1ad   : > { %v2008_v26 = vpop.f32.mrf.mxu0  ;;  %v2021_v27 = vpop.f32.mrf.mxu1 }
 0x1ae   : > { %v2009_v29 = vadd.f32 %v2008_v26, %v1996_v25 }
 0x1b0   : > { %v2022_v30 = vadd.f32 %v2021_v27, %v2009_v29 }
 0x1b4   : > { %v2034_v31 = vpop.f32.mrf.mxu2  ;;  %v2047_v33 = vpop.f32.mrf.mxu3 }
 0x1b5   : > { %v2035_v41 = vadd.f32 %v2034_v31, %v2022_v30  ;;  %v2010_v42 = vpop.f32.mrf.mxu0  ;;  %v2023_v28 = vpop.f32.mrf.mxu1 }
 0x1b7   : > { %v2048_v21 = vadd.f32 %v2047_v33, %v2035_v41 }
 0x1b9   : > { %v2054_v32 = vmax.f32 %v2048_v21, 0.0 }
 0x1bb   : > { %2058 = vst [vmem:[%s4156_s20 + $0x18] sm:$0xff] %v2054_v32 }
 0x1bc   : > { %v2036_v34 = vpop.f32.mrf.mxu2  ;;  %v2049_v35 = vpop.f32.mrf.mxu3 }
 0x1bd   : > { %3587 = shalt.err (!%p3584_p4)
}
 0x1be   : > { %3328 = dma.vmem_to_hbm [thread:$0]  (%p3771_p6), %s2094_s8, 512, %s2096_s19, %s2065_s14  }
 0x1bf PF: > { %s4247_s22 = sld [smem:[#allocation23_spill]]  ;;  %s2107_s23 = sand.u32 1, %s3640_s0  }
 0x1c0   : > { %s2108_s12 = scalar_lea.sflag [#allocation8], %s2107_s23 }
 0x1c5   : > { %p4248_p11 = scmp.ge.s32.totalorder %s4247_s22, 2 }
 0x1c7   : > { %p3343_p12 = pnand %p4248_p11, %p3777_p10 }
 0x1c9   : > { %p3344_p2 = pneg %p3343_p12 }
 0x1cb   : > { %3631 = dma.done.wait (%p3344_p2), %s2108_s12, 512  }
 0x1cc   : > { %3633 = vsyncadd (%p3344_p2), %s2108_s12, 4294966784  ;;  %s2118_s28 = scalar_lea.sflag [#allocation14], %s2107_s23 }
 0x1cd   : > { %3635 = dma.done.wait (%p3344_p2), %s2118_s28, 512  }
 0x1ce   : > { %3637 = vsyncadd (%p3344_p2), %s2118_s28, 4294966784  ;;  %s4249_s13 = sld [smem:[#allocation25_spill]]  ;;  %s4254_s0 = smov %s3644_s1 }
 0x1cf   : > { %s4250_s25 = sld [smem:[#allocation21_spill]]  ;;  %s4256_s10 = smov %s3656_s11 }
 0x1d0   : > { %s4251_s9 = sld [smem:[#allocation27_spill]] }
 0x1d1   : > { %s4252_s17 = sld [smem:[#allocation22_spill]] }
 0x1d2   : > { %s4253_s12 = sld [smem:[#allocation26_spill]] }
 0x1d4   : > { %p40_p6 = scmp.ge.s32.totalorder %s4249_s13, 4  }
 0x1d5   : > { %s4255_s1 = smov %s4250_s25 }
 0x1d6   :  { %42 = sbr.rel (!%p40_p6) target bundleno = 19 (0x13), region = 145 }
 0x1d7   : > { %s4257_s11 = smov %s4252_s17 }
 0x1db   :  { %2124 = vsyncpa [#allocation7], 1 }
 0x1dc   :  { %2126 = vsyncpa [#allocation7 + $0x1], 1 }
 0x1dd   :  { %2127 = vsyncpa [#allocation10], 1 }
 0x1de   :  { %2129 = vsyncpa [#allocation10 + $0x1], 1 }
 0x1df   :  { %2130 = vsyncpa [#allocation8], 1 }
 0x1e0   :  { %2132 = vsyncpa [#allocation8 + $0x1], 1 }
 0x1e1   :  { %2133 = vsyncpa [#allocation14], 1 }
 0x1e2   :  { %2135 = vsyncpa [#allocation14 + $0x1], 1 }

</bundles_post_ra>
